<compile_context>
chip_gen: v6e
topology: v6e:2x2x1
jax: 0.10.0
libtpu: 0.0.40
codegen_flags: <defaults>
</compile_context>

<pallas_src>
import functools

import jax
import jax.numpy as jnp
from jax.experimental import pallas as pl
from jax.experimental.pallas import tpu as pltpu


def _round_up(x, m):
    return (x + m - 1) // m * m


def _deconv_grouped_kernel(x_ref, w_ref, b_ref, o_ref, *, rows_per_d, wq, lq, cout):
    """One (batch, depth-slab) tile of the grouped polyphase transposed conv.

    x_ref: (slab_rows, 3*Cin)      flattened padded input slab; the 3 W-axis taps are
                                   already folded into the channel axis by the wrapper.
    w_ref: (16, 3*Cin, 2*Cout)     weights indexed by (rd, rh, a, b) = parity-group x
                                   (d,h) tap offset; W parities fused in the columns.
    b_ref: (4, 2*Cout)             bias tiled per (rd, rh) parity group.
    o_ref: (lq, 8*Cout)            all 8 parity outputs for lq coarse output positions.
    """
    cout2 = 2 * cout
    # Per-(rd, rh) parity-group accumulators; bias folded into the init (hoisted, one-time).
    accs = [[jnp.broadcast_to(b_ref[pl.ds(2 * rd + rh, 1), :], (lq, cout2))
             .astype(jnp.float32) for rh in range(2)] for rd in range(2)]

    # 9 statically-offset (sd, sh) input shifts; each loaded slice feeds up to 4 matmuls
    # (one per parity group that uses this shift).  Offsets are multiples of 8 (wq padded
    # to a multiple of 8) -> sublane-aligned loads; full unroll keeps everything static.
    for sd in range(3):
        for sh in range(3):
            off = sd * rows_per_d + sh * wq
            xs = x_ref[pl.ds(off, lq), :]                       # (lq, 3*Cin)
            for rd in range(2):
                a = sd - rd
                if a not in (0, 1):
                    continue
                for rh in range(2):
                    bb = sh - rh
                    if bb not in (0, 1):
                        continue
                    widx = ((rd * 2 + rh) * 2 + a) * 2 + bb     # (rd, rh, a, b) flattened
                    accs[rd][rh] = accs[rd][rh] + jnp.dot(
                        xs, w_ref[widx], preferred_element_type=jnp.float32)

    # Single store per parity group into its lane range of the output block.
    for rd in range(2):
        for rh in range(2):
            g = rd * 2 + rh
            o_ref[:, pl.ds(g * cout2, cout2)] = accs[rd][rh].astype(o_ref.dtype)


def upsampling_deconv3d(x, w_pt, b, *, d_tile=None, compute_dtype=jnp.float32):
    """ConvTranspose3d(kernel=4, stride=2, padding=1, output_padding=0, bias=True).

    x:    (N, Cin, D, H, W)       float32
    w_pt: (Cin, Cout, 4, 4, 4)    PyTorch ConvTranspose3d weight layout
    b:    (Cout,)
    Returns (N, Cout, 2D, 2H, 2W) float32.
    """
    N, Cin, D, H, W = x.shape
    Cout, K = w_pt.shape[1], w_pt.shape[2]
    assert K == 4 and w_pt.shape[0] == Cin

    # ---------------- grouped polyphase weights ----------------
    # Per axis: y[2q + r] = sum_{m in {0,1}} wflip[2m + r] * x_pad1[q + m + r].
    # Group parities by (rd, rh); within a group only (d,h) tap offsets (a, b) in {0,1}^2
    # are needed, and the W parities (rw) are fused into the output columns with the
    # W shift sw = mw + rw living in the 3*Cin contraction.
    wf = jnp.transpose(jnp.flip(w_pt, axis=(2, 3, 4)), (2, 3, 4, 0, 1))  # (K,K,K,Cin,Cout)
    w_grp = jnp.zeros((2, 2, 2, 2, 3, Cin, 2, Cout), w_pt.dtype)
    for rd in range(2):
        for rh in range(2):
            for a in range(2):
                for bb in range(2):
                    for rw in range(2):
                        for mw in range(2):
                            w_grp = w_grp.at[rd, rh, a, bb, mw + rw, :, rw, :].set(
                                wf[2 * a + rd, 2 * bb + rh, 2 * mw + rw])
    w_k = w_grp.reshape(16, 3 * Cin, 2 * Cout).astype(compute_dtype)
    b_k = jnp.tile(b.astype(jnp.float32), (8,)).reshape(4, 2 * Cout)

    # ---------------- input layout ----------------
    x_cl = jnp.transpose(x, (0, 2, 3, 4, 1))                        # NDHWC
    x_p = jnp.pad(x_cl, ((0, 0), (1, 1), (1, 1), (1, 1), (0, 0)))   # halo of 1
    # Fold the 3 W-axis shifts into channels: xw[..., qw, sw*Cin + c] = x_p[..., qw+sw, c].
    xw = jnp.concatenate([x_p[:, :, :, sw:sw + W, :] for sw in range(3)], axis=-1)
    wq = _round_up(W, 8)            # aligned flattened-W extent -> aligned slice offsets
    xw = jnp.pad(xw, ((0, 0), (0, 0), (0, 0), (0, wq - W), (0, 0)))
    hp = H + 2
    rows_per_d = hp * wq            # multiple of 8
    cin3 = 3 * Cin

    # ---------------- depth-slab tiling ----------------
    if d_tile is None:              # target ~4 MiB f32 output blocks
        d_tile = max(1, (4 * 1024 * 1024) // (rows_per_d * 8 * Cout * 4))
    d_tile = max(1, min(int(d_tile), D))
    nd = -(-D // d_tile)            # cdiv
    dq = nd * d_tile
    lq = d_tile * rows_per_d                          # output rows per slab
    slab_rows = (d_tile + 2) * rows_per_d + 2 * wq    # + (sd,sh) halo

    x_flat = xw.reshape(N, (D + 2) * rows_per_d, cin3)
    total_rows = (nd - 1) * lq + slab_rows
    x_flat = jnp.pad(x_flat, ((0, 0), (0, total_rows - (D + 2) * rows_per_d), (0, 0)))
    # Materialize the slightly overlapping input slabs (2 coarse-depth rows of halo each)
    # so plain BlockSpec auto-pipelining can stream them with bounded VMEM.
    x_slabs = jnp.stack(
        [x_flat[:, d * lq:d * lq + slab_rows, :] for d in range(nd)], axis=1
    ).reshape(N * nd, slab_rows, cin3).astype(compute_dtype)

    kernel = functools.partial(_deconv_grouped_kernel,
                               rows_per_d=rows_per_d, wq=wq, lq=lq, cout=Cout)
    out_flat = pl.pallas_call(
        kernel,
        out_shape=jax.ShapeDtypeStruct((N, nd * lq, 8 * Cout), jnp.float32),
        grid_spec=pltpu.PrefetchScalarGridSpec(
            num_scalar_prefetch=0,
            grid=(N, nd),
            in_specs=[
                pl.BlockSpec((None, slab_rows, cin3), lambda n, d: (n * nd + d, 0, 0)),
                pl.BlockSpec((16, cin3, 2 * Cout), lambda n, d: (0, 0, 0)),
                pl.BlockSpec((4, 2 * Cout), lambda n, d: (0, 0)),
            ],
            out_specs=pl.BlockSpec((None, lq, 8 * Cout), lambda n, d: (n, d, 0)),
        ),
        compiler_params=pltpu.CompilerParams(
            dimension_semantics=("parallel", "parallel"),
            vmem_limit_bytes=48 * 1024 * 1024,
        ),
    )(x_slabs, w_k, b_k)

    # ---------------- un-flatten, crop, interleave parities ----------------
    # Column layout is p*Cout + co with p = rd*4 + rh*2 + rw (group g = rd*2+rh occupies
    # the contiguous 2*Cout columns [g*2*Cout, (g+1)*2*Cout)), identical to a plain
    # (2, 2, 2, Cout) parity unfold of the last axis.
    y = out_flat.reshape(N, dq, hp, wq, 2, 2, 2, Cout)[:, :D, :H, :W]
    y = jnp.transpose(y, (0, 1, 4, 2, 5, 3, 6, 7)).reshape(N, 2 * D, 2 * H, 2 * W, Cout)
    return jnp.transpose(y, (0, 4, 1, 2, 3))


def _reference_deconv3d(x, w_pt, b):
    # pure-JAX reference (transposed conv via lhs dilation)
    w_conv = jnp.transpose(jnp.flip(w_pt, axis=(2, 3, 4)), (1, 0, 2, 3, 4))  # (Cout,Cin,K,K,K)
    y = jax.lax.conv_general_dilated(
        x, w_conv,
        window_strides=(1, 1, 1),
        padding=[(2, 2)] * 3,
        lhs_dilation=(2, 2, 2),
        dimension_numbers=("NCDHW", "OIDHW", "NCDHW"),
    )
    return y + b[None, :, None, None, None]


if __name__ == "__main__":
    N, Cin, Cout, K = 2, 4, 8, 4
    D = H = W = 6

    key = jax.random.PRNGKey(0)
    kx, kw, kb = jax.random.split(key, 3)
    x = jax.random.normal(kx, (N, Cin, D, H, W), jnp.float32)
    w_pt = jax.random.normal(kw, (Cin, Cout, K, K, K), jnp.float32) * 0.1
    b = jax.random.normal(kb, (Cout,), jnp.float32) * 0.1

    y_ref = _reference_deconv3d(x, w_pt, b)

    # f32 path, multi-slab depth tiling (d_tile=2 -> 3 slabs) to exercise the halo logic.
    fwd_f32 = jax.jit(functools.partial(upsampling_deconv3d, d_tile=2))
    y = jax.block_until_ready(fwd_f32(x, w_pt, b))
    assert y.shape == (N, Cout, 2 * D, 2 * H, 2 * W), y.shape
    assert jnp.allclose(y, y_ref, atol=1e-4, rtol=1e-4), float(jnp.max(jnp.abs(y - y_ref)))

    # bf16 MXU path (recommended on v6e/v7x): bf16 inputs, f32 accumulation, f32 output.
    fwd_bf16 = jax.jit(functools.partial(upsampling_deconv3d, compute_dtype=jnp.bfloat16))
    y16 = jax.block_until_ready(fwd_bf16(x, w_pt, b))
    y_ref16 = _reference_deconv3d(
        x.astype(jnp.bfloat16).astype(jnp.float32),
        w_pt.astype(jnp.bfloat16).astype(jnp.float32), b)
    assert jnp.allclose(y16, y_ref16, atol=1e-2, rtol=1e-2), \
        float(jnp.max(jnp.abs(y16 - y_ref16)))

    print("KERNEL_OK")
</pallas_src>

<mosaic_0001>
module attributes {stable_mosaic.version = 11 : i64} {
  func.func @_deconv_grouped_kernel(%arg0: i32, %arg1: i32, %arg2: memref<1x272x12xf32, #tpu.memory_space<vmem>>, %arg3: memref<16x12x16xf32, #tpu.memory_space<vmem>>, %arg4: memref<4x16xf32, #tpu.memory_space<vmem>>, %arg5: memref<1x128x64xf32, #tpu.memory_space<vmem>>) attributes {dimension_semantics = [#tpu.dimension_semantics<parallel>, #tpu.dimension_semantics<parallel>], iteration_bounds = array<i64: 2, 3>, scalar_prefetch = 0 : i64, scratch_operands = 0 : i64, tpu.core_type = #tpu.core_type<tc>, window_params = [{transform_indices = @transform_0, window_bounds = array<i64: 1, 272, 12>}, {pipeline_mode = #tpu.pipeline_mode<synchronous>, transform_indices = @transform_1, window_bounds = array<i64: 16, 12, 16>}, {pipeline_mode = #tpu.pipeline_mode<synchronous>, transform_indices = @transform_2, window_bounds = array<i64: 4, 16>}, {transform_indices = @transform_3, window_bounds = array<i64: 1, 128, 64>}]} {
    %c0 = arith.constant 0 : index
    %c0_0 = arith.constant 0 : index
    %0 = vector.load %arg4[%c0, %c0_0] : memref<4x16xf32, #tpu.memory_space<vmem>>, vector<1x16xf32>
    %1 = vector.shape_cast %0 : vector<1x16xf32> to vector<1x16xf32>
    %2 = vector.broadcast %1 : vector<1x16xf32> to vector<128x16xf32>
    %c1 = arith.constant 1 : index
    %c0_1 = arith.constant 0 : index
    %3 = vector.load %arg4[%c1, %c0_1] : memref<4x16xf32, #tpu.memory_space<vmem>>, vector<1x16xf32>
    %4 = vector.shape_cast %3 : vector<1x16xf32> to vector<1x16xf32>
    %5 = vector.broadcast %4 : vector<1x16xf32> to vector<128x16xf32>
    %c2 = arith.constant 2 : index
    %c0_2 = arith.constant 0 : index
    %6 = vector.load %arg4[%c2, %c0_2] : memref<4x16xf32, #tpu.memory_space<vmem>>, vector<1x16xf32>
    %7 = vector.shape_cast %6 : vector<1x16xf32> to vector<1x16xf32>
    %8 = vector.broadcast %7 : vector<1x16xf32> to vector<128x16xf32>
    %c3 = arith.constant 3 : index
    %c0_3 = arith.constant 0 : index
    %9 = vector.load %arg4[%c3, %c0_3] : memref<4x16xf32, #tpu.memory_space<vmem>>, vector<1x16xf32>
    %10 = vector.shape_cast %9 : vector<1x16xf32> to vector<1x16xf32>
    %11 = vector.broadcast %10 : vector<1x16xf32> to vector<128x16xf32>
    %c0_4 = arith.constant 0 : index
    %c0_5 = arith.constant 0 : index
    %c0_6 = arith.constant 0 : index
    %12 = vector.load %arg2[%c0_4, %c0_5, %c0_6] : memref<1x272x12xf32, #tpu.memory_space<vmem>>, vector<1x128x12xf32>
    %13 = vector.shape_cast %12 : vector<1x128x12xf32> to vector<128x12xf32>
    %c0_7 = arith.constant 0 : index
    %c0_8 = arith.constant 0 : index
    %c0_9 = arith.constant 0 : index
    %14 = vector.load %arg3[%c0_7, %c0_8, %c0_9] : memref<16x12x16xf32, #tpu.memory_space<vmem>>, vector<1x12x16xf32>
    %15 = vector.shape_cast %14 : vector<1x12x16xf32> to vector<12x16xf32>
    %cst = arith.constant dense<0.000000e+00> : vector<128x16xf32>
    %16 = tpu.matmul %13, %15, %cst {dimension_numbers = #tpu.dot_dimension_numbers<[1], [0], [0], [1], [0, 0, 1, 1], [], []>} : vector<128x12xf32>, vector<12x16xf32>, vector<128x16xf32> -> vector<128x16xf32>
    %17 = arith.addf %2, %16 : vector<128x16xf32>
    %c0_10 = arith.constant 0 : index
    %c8 = arith.constant 8 : index
    %c0_11 = arith.constant 0 : index
    %18 = vector.load %arg2[%c0_10, %c8, %c0_11] : memref<1x272x12xf32, #tpu.memory_space<vmem>>, vector<1x128x12xf32>
    %19 = vector.shape_cast %18 : vector<1x128x12xf32> to vector<128x12xf32>
    %c1_12 = arith.constant 1 : index
    %c0_13 = arith.constant 0 : index
    %c0_14 = arith.constant 0 : index
    %20 = vector.load %arg3[%c1_12, %c0_13, %c0_14] : memref<16x12x16xf32, #tpu.memory_space<vmem>>, vector<1x12x16xf32>
    %21 = vector.shape_cast %20 : vector<1x12x16xf32> to vector<12x16xf32>
    %cst_15 = arith.constant dense<0.000000e+00> : vector<128x16xf32>
    %22 = tpu.matmul %19, %21, %cst_15 {dimension_numbers = #tpu.dot_dimension_numbers<[1], [0], [0], [1], [0, 0, 1, 1], [], []>} : vector<128x12xf32>, vector<12x16xf32>, vector<128x16xf32> -> vector<128x16xf32>
    %23 = arith.addf %17, %22 : vector<128x16xf32>
    %c4 = arith.constant 4 : index
    %c0_16 = arith.constant 0 : index
    %c0_17 = arith.constant 0 : index
    %24 = vector.load %arg3[%c4, %c0_16, %c0_17] : memref<16x12x16xf32, #tpu.memory_space<vmem>>, vector<1x12x16xf32>
    %25 = vector.shape_cast %24 : vector<1x12x16xf32> to vector<12x16xf32>
    %cst_18 = arith.constant dense<0.000000e+00> : vector<128x16xf32>
    %26 = tpu.matmul %19, %25, %cst_18 {dimension_numbers = #tpu.dot_dimension_numbers<[1], [0], [0], [1], [0, 0, 1, 1], [], []>} : vector<128x12xf32>, vector<12x16xf32>, vector<128x16xf32> -> vector<128x16xf32>
    %27 = arith.addf %5, %26 : vector<128x16xf32>
    %c0_19 = arith.constant 0 : index
    %c16 = arith.constant 16 : index
    %c0_20 = arith.constant 0 : index
    %28 = vector.load %arg2[%c0_19, %c16, %c0_20] : memref<1x272x12xf32, #tpu.memory_space<vmem>>, vector<1x128x12xf32>
    %29 = vector.shape_cast %28 : vector<1x128x12xf32> to vector<128x12xf32>
    %c5 = arith.constant 5 : index
    %c0_21 = arith.constant 0 : index
    %c0_22 = arith.constant 0 : index
    %30 = vector.load %arg3[%c5, %c0_21, %c0_22] : memref<16x12x16xf32, #tpu.memory_space<vmem>>, vector<1x12x16xf32>
    %31 = vector.shape_cast %30 : vector<1x12x16xf32> to vector<12x16xf32>
    %cst_23 = arith.constant dense<0.000000e+00> : vector<128x16xf32>
    %32 = tpu.matmul %29, %31, %cst_23 {dimension_numbers = #tpu.dot_dimension_numbers<[1], [0], [0], [1], [0, 0, 1, 1], [], []>} : vector<128x12xf32>, vector<12x16xf32>, vector<128x16xf32> -> vector<128x16xf32>
    %33 = arith.addf %27, %32 : vector<128x16xf32>
    %c0_24 = arith.constant 0 : index
    %c64 = arith.constant 64 : index
    %c0_25 = arith.constant 0 : index
    %34 = vector.load %arg2[%c0_24, %c64, %c0_25] : memref<1x272x12xf32, #tpu.memory_space<vmem>>, vector<1x128x12xf32>
    %35 = vector.shape_cast %34 : vector<1x128x12xf32> to vector<128x12xf32>
    %c2_26 = arith.constant 2 : index
    %c0_27 = arith.constant 0 : index
    %c0_28 = arith.constant 0 : index
    %36 = vector.load %arg3[%c2_26, %c0_27, %c0_28] : memref<16x12x16xf32, #tpu.memory_space<vmem>>, vector<1x12x16xf32>
    %37 = vector.shape_cast %36 : vector<1x12x16xf32> to vector<12x16xf32>
    %cst_29 = arith.constant dense<0.000000e+00> : vector<128x16xf32>
    %38 = tpu.matmul %35, %37, %cst_29 {dimension_numbers = #tpu.dot_dimension_numbers<[1], [0], [0], [1], [0, 0, 1, 1], [], []>} : vector<128x12xf32>, vector<12x16xf32>, vector<128x16xf32> -> vector<128x16xf32>
    %39 = arith.addf %23, %38 : vector<128x16xf32>
    %c8_30 = arith.constant 8 : index
    %c0_31 = arith.constant 0 : index
    %c0_32 = arith.constant 0 : index
    %40 = vector.load %arg3[%c8_30, %c0_31, %c0_32] : memref<16x12x16xf32, #tpu.memory_space<vmem>>, vector<1x12x16xf32>
    %41 = vector.shape_cast %40 : vector<1x12x16xf32> to vector<12x16xf32>
    %cst_33 = arith.constant dense<0.000000e+00> : vector<128x16xf32>
    %42 = tpu.matmul %35, %41, %cst_33 {dimension_numbers = #tpu.dot_dimension_numbers<[1], [0], [0], [1], [0, 0, 1, 1], [], []>} : vector<128x12xf32>, vector<12x16xf32>, vector<128x16xf32> -> vector<128x16xf32>
    %43 = arith.addf %8, %42 : vector<128x16xf32>
    %c0_34 = arith.constant 0 : index
    %c72 = arith.constant 72 : index
    %c0_35 = arith.constant 0 : index
    %44 = vector.load %arg2[%c0_34, %c72, %c0_35] : memref<1x272x12xf32, #tpu.memory_space<vmem>>, vector<1x128x12xf32>
    %45 = vector.shape_cast %44 : vector<1x128x12xf32> to vector<128x12xf32>
    %c3_36 = arith.constant 3 : index
    %c0_37 = arith.constant 0 : index
    %c0_38 = arith.constant 0 : index
    %46 = vector.load %arg3[%c3_36, %c0_37, %c0_38] : memref<16x12x16xf32, #tpu.memory_space<vmem>>, vector<1x12x16xf32>
    %47 = vector.shape_cast %46 : vector<1x12x16xf32> to vector<12x16xf32>
    %cst_39 = arith.constant dense<0.000000e+00> : vector<128x16xf32>
    %48 = tpu.matmul %45, %47, %cst_39 {dimension_numbers = #tpu.dot_dimension_numbers<[1], [0], [0], [1], [0, 0, 1, 1], [], []>} : vector<128x12xf32>, vector<12x16xf32>, vector<128x16xf32> -> vector<128x16xf32>
    %49 = arith.addf %39, %48 : vector<128x16xf32>
    %c6 = arith.constant 6 : index
    %c0_40 = arith.constant 0 : index
    %c0_41 = arith.constant 0 : index
    %50 = vector.load %arg3[%c6, %c0_40, %c0_41] : memref<16x12x16xf32, #tpu.memory_space<vmem>>, vector<1x12x16xf32>
    %51 = vector.shape_cast %50 : vector<1x12x16xf32> to vector<12x16xf32>
    %cst_42 = arith.constant dense<0.000000e+00> : vector<128x16xf32>
    %52 = tpu.matmul %45, %51, %cst_42 {dimension_numbers = #tpu.dot_dimension_numbers<[1], [0], [0], [1], [0, 0, 1, 1], [], []>} : vector<128x12xf32>, vector<12x16xf32>, vector<128x16xf32> -> vector<128x16xf32>
    %53 = arith.addf %33, %52 : vector<128x16xf32>
    %c9 = arith.constant 9 : index
    %c0_43 = arith.constant 0 : index
    %c0_44 = arith.constant 0 : index
    %54 = vector.load %arg3[%c9, %c0_43, %c0_44] : memref<16x12x16xf32, #tpu.memory_space<vmem>>, vector<1x12x16xf32>
    %55 = vector.shape_cast %54 : vector<1x12x16xf32> to vector<12x16xf32>
    %cst_45 = arith.constant dense<0.000000e+00> : vector<128x16xf32>
    %56 = tpu.matmul %45, %55, %cst_45 {dimension_numbers = #tpu.dot_dimension_numbers<[1], [0], [0], [1], [0, 0, 1, 1], [], []>} : vector<128x12xf32>, vector<12x16xf32>, vector<128x16xf32> -> vector<128x16xf32>
    %57 = arith.addf %43, %56 : vector<128x16xf32>
    %c12 = arith.constant 12 : index
    %c0_46 = arith.constant 0 : index
    %c0_47 = arith.constant 0 : index
    %58 = vector.load %arg3[%c12, %c0_46, %c0_47] : memref<16x12x16xf32, #tpu.memory_space<vmem>>, vector<1x12x16xf32>
    %59 = vector.shape_cast %58 : vector<1x12x16xf32> to vector<12x16xf32>
    %cst_48 = arith.constant dense<0.000000e+00> : vector<128x16xf32>
    %60 = tpu.matmul %45, %59, %cst_48 {dimension_numbers = #tpu.dot_dimension_numbers<[1], [0], [0], [1], [0, 0, 1, 1], [], []>} : vector<128x12xf32>, vector<12x16xf32>, vector<128x16xf32> -> vector<128x16xf32>
    %61 = arith.addf %11, %60 : vector<128x16xf32>
    %c0_49 = arith.constant 0 : index
    %c80 = arith.constant 80 : index
    %c0_50 = arith.constant 0 : index
    %62 = vector.load %arg2[%c0_49, %c80, %c0_50] : memref<1x272x12xf32, #tpu.memory_space<vmem>>, vector<1x128x12xf32>
    %63 = vector.shape_cast %62 : vector<1x128x12xf32> to vector<128x12xf32>
    %c7 = arith.constant 7 : index
    %c0_51 = arith.constant 0 : index
    %c0_52 = arith.constant 0 : index
    %64 = vector.load %arg3[%c7, %c0_51, %c0_52] : memref<16x12x16xf32, #tpu.memory_space<vmem>>, vector<1x12x16xf32>
    %65 = vector.shape_cast %64 : vector<1x12x16xf32> to vector<12x16xf32>
    %cst_53 = arith.constant dense<0.000000e+00> : vector<128x16xf32>
    %66 = tpu.matmul %63, %65, %cst_53 {dimension_numbers = #tpu.dot_dimension_numbers<[1], [0], [0], [1], [0, 0, 1, 1], [], []>} : vector<128x12xf32>, vector<12x16xf32>, vector<128x16xf32> -> vector<128x16xf32>
    %67 = arith.addf %53, %66 : vector<128x16xf32>
    %c13 = arith.constant 13 : index
    %c0_54 = arith.constant 0 : index
    %c0_55 = arith.constant 0 : index
    %68 = vector.load %arg3[%c13, %c0_54, %c0_55] : memref<16x12x16xf32, #tpu.memory_space<vmem>>, vector<1x12x16xf32>
    %69 = vector.shape_cast %68 : vector<1x12x16xf32> to vector<12x16xf32>
    %cst_56 = arith.constant dense<0.000000e+00> : vector<128x16xf32>
    %70 = tpu.matmul %63, %69, %cst_56 {dimension_numbers = #tpu.dot_dimension_numbers<[1], [0], [0], [1], [0, 0, 1, 1], [], []>} : vector<128x12xf32>, vector<12x16xf32>, vector<128x16xf32> -> vector<128x16xf32>
    %71 = arith.addf %61, %70 : vector<128x16xf32>
    %c0_57 = arith.constant 0 : index
    %c128 = arith.constant 128 : index
    %c0_58 = arith.constant 0 : index
    %72 = vector.load %arg2[%c0_57, %c128, %c0_58] : memref<1x272x12xf32, #tpu.memory_space<vmem>>, vector<1x128x12xf32>
    %73 = vector.shape_cast %72 : vector<1x128x12xf32> to vector<128x12xf32>
    %c10 = arith.constant 10 : index
    %c0_59 = arith.constant 0 : index
    %c0_60 = arith.constant 0 : index
    %74 = vector.load %arg3[%c10, %c0_59, %c0_60] : memref<16x12x16xf32, #tpu.memory_space<vmem>>, vector<1x12x16xf32>
    %75 = vector.shape_cast %74 : vector<1x12x16xf32> to vector<12x16xf32>
    %cst_61 = arith.constant dense<0.000000e+00> : vector<128x16xf32>
    %76 = tpu.matmul %73, %75, %cst_61 {dimension_numbers = #tpu.dot_dimension_numbers<[1], [0], [0], [1], [0, 0, 1, 1], [], []>} : vector<128x12xf32>, vector<12x16xf32>, vector<128x16xf32> -> vector<128x16xf32>
    %77 = arith.addf %57, %76 : vector<128x16xf32>
    %c0_62 = arith.constant 0 : index
    %c136 = arith.constant 136 : index
    %c0_63 = arith.constant 0 : index
    %78 = vector.load %arg2[%c0_62, %c136, %c0_63] : memref<1x272x12xf32, #tpu.memory_space<vmem>>, vector<1x128x12xf32>
    %79 = vector.shape_cast %78 : vector<1x128x12xf32> to vector<128x12xf32>
    %c11 = arith.constant 11 : index
    %c0_64 = arith.constant 0 : index
    %c0_65 = arith.constant 0 : index
    %80 = vector.load %arg3[%c11, %c0_64, %c0_65] : memref<16x12x16xf32, #tpu.memory_space<vmem>>, vector<1x12x16xf32>
    %81 = vector.shape_cast %80 : vector<1x12x16xf32> to vector<12x16xf32>
    %cst_66 = arith.constant dense<0.000000e+00> : vector<128x16xf32>
    %82 = tpu.matmul %79, %81, %cst_66 {dimension_numbers = #tpu.dot_dimension_numbers<[1], [0], [0], [1], [0, 0, 1, 1], [], []>} : vector<128x12xf32>, vector<12x16xf32>, vector<128x16xf32> -> vector<128x16xf32>
    %83 = arith.addf %77, %82 : vector<128x16xf32>
    %c14 = arith.constant 14 : index
    %c0_67 = arith.constant 0 : index
    %c0_68 = arith.constant 0 : index
    %84 = vector.load %arg3[%c14, %c0_67, %c0_68] : memref<16x12x16xf32, #tpu.memory_space<vmem>>, vector<1x12x16xf32>
    %85 = vector.shape_cast %84 : vector<1x12x16xf32> to vector<12x16xf32>
    %cst_69 = arith.constant dense<0.000000e+00> : vector<128x16xf32>
    %86 = tpu.matmul %79, %85, %cst_69 {dimension_numbers = #tpu.dot_dimension_numbers<[1], [0], [0], [1], [0, 0, 1, 1], [], []>} : vector<128x12xf32>, vector<12x16xf32>, vector<128x16xf32> -> vector<128x16xf32>
    %87 = arith.addf %71, %86 : vector<128x16xf32>
    %c0_70 = arith.constant 0 : index
    %c144 = arith.constant 144 : index
    %c0_71 = arith.constant 0 : index
    %88 = vector.load %arg2[%c0_70, %c144, %c0_71] : memref<1x272x12xf32, #tpu.memory_space<vmem>>, vector<1x128x12xf32>
    %89 = vector.shape_cast %88 : vector<1x128x12xf32> to vector<128x12xf32>
    %c15 = arith.constant 15 : index
    %c0_72 = arith.constant 0 : index
    %c0_73 = arith.constant 0 : index
    %90 = vector.load %arg3[%c15, %c0_72, %c0_73] : memref<16x12x16xf32, #tpu.memory_space<vmem>>, vector<1x12x16xf32>
    %91 = vector.shape_cast %90 : vector<1x12x16xf32> to vector<12x16xf32>
    %cst_74 = arith.constant dense<0.000000e+00> : vector<128x16xf32>
    %92 = tpu.matmul %89, %91, %cst_74 {dimension_numbers = #tpu.dot_dimension_numbers<[1], [0], [0], [1], [0, 0, 1, 1], [], []>} : vector<128x12xf32>, vector<12x16xf32>, vector<128x16xf32> -> vector<128x16xf32>
    %93 = arith.addf %87, %92 : vector<128x16xf32>
    %c0_75 = arith.constant 0 : index
    %c0_76 = arith.constant 0 : index
    %c0_77 = arith.constant 0 : index
    %94 = vector.load %arg5[%c0_75, %c0_76, %c0_77] : memref<1x128x64xf32, #tpu.memory_space<vmem>>, vector<1x128x16xf32>
    %95 = vector.shape_cast %94 : vector<1x128x16xf32> to vector<128x16xf32>
    %96 = vector.shape_cast %49 : vector<128x16xf32> to vector<1x128x16xf32>
    tpu.vector_store %arg5[%c0_75, %c0_76, %c0_77], %96 {strides = array<i32>} : memref<1x128x64xf32, #tpu.memory_space<vmem>>, vector<1x128x16xf32>,
    %c0_78 = arith.constant 0 : index
    %c0_79 = arith.constant 0 : index
    %c16_80 = arith.constant 16 : index
    %97 = vector.load %arg5[%c0_78, %c0_79, %c16_80] : memref<1x128x64xf32, #tpu.memory_space<vmem>>, vector<1x128x16xf32>
    %98 = vector.shape_cast %97 : vector<1x128x16xf32> to vector<128x16xf32>
    %99 = vector.shape_cast %67 : vector<128x16xf32> to vector<1x128x16xf32>
    tpu.vector_store %arg5[%c0_78, %c0_79, %c16_80], %99 {strides = array<i32>} : memref<1x128x64xf32, #tpu.memory_space<vmem>>, vector<1x128x16xf32>,
    %c0_81 = arith.constant 0 : index
    %c0_82 = arith.constant 0 : index
    %c32 = arith.constant 32 : index
    %100 = vector.load %arg5[%c0_81, %c0_82, %c32] : memref<1x128x64xf32, #tpu.memory_space<vmem>>, vector<1x128x16xf32>
    %101 = vector.shape_cast %100 : vector<1x128x16xf32> to vector<128x16xf32>
    %102 = vector.shape_cast %83 : vector<128x16xf32> to vector<1x128x16xf32>
    tpu.vector_store %arg5[%c0_81, %c0_82, %c32], %102 {strides = array<i32>} : memref<1x128x64xf32, #tpu.memory_space<vmem>>, vector<1x128x16xf32>,
    %c0_83 = arith.constant 0 : index
    %c0_84 = arith.constant 0 : index
    %c48 = arith.constant 48 : index
    %103 = vector.load %arg5[%c0_83, %c0_84, %c48] : memref<1x128x64xf32, #tpu.memory_space<vmem>>, vector<1x128x16xf32>
    %104 = vector.shape_cast %103 : vector<1x128x16xf32> to vector<128x16xf32>
    %105 = vector.shape_cast %93 : vector<128x16xf32> to vector<1x128x16xf32>
    tpu.vector_store %arg5[%c0_83, %c0_84, %c48], %105 {strides = array<i32>} : memref<1x128x64xf32, #tpu.memory_space<vmem>>, vector<1x128x16xf32>,
    return
  }
  func.func @transform_0(%arg0: i32, %arg1: i32) -> (i32, i32, i32) {
    %c3_i32 = arith.constant 3 : i32
    %0 = arith.muli %arg0, %c3_i32 : i32
    %1 = arith.addi %0, %arg1 : i32
    %c0_i32 = arith.constant 0 : i32
    %c0_i32_0 = arith.constant 0 : i32
    %c0_i32_1 = arith.constant 0 : i32
    return %1, %c0_i32, %c0_i32_0 : i32, i32, i32
  }
  func.func @transform_1(%arg0: i32, %arg1: i32) -> (i32, i32, i32) {
    %c0_i32 = arith.constant 0 : i32
    %c0_i32_0 = arith.constant 0 : i32
    %c0_i32_1 = arith.constant 0 : i32
    %c0_i32_2 = arith.constant 0 : i32
    return %c0_i32, %c0_i32_0, %c0_i32_1 : i32, i32, i32
  }
  func.func @transform_2(%arg0: i32, %arg1: i32) -> (i32, i32) {
    %c0_i32 = arith.constant 0 : i32
    %c0_i32_0 = arith.constant 0 : i32
    %c0_i32_1 = arith.constant 0 : i32
    return %c0_i32, %c0_i32_0 : i32, i32
  }
  func.func @transform_3(%arg0: i32, %arg1: i32) -> (i32, i32, i32) {
    %c0_i32 = arith.constant 0 : i32
    %c0_i32_0 = arith.constant 0 : i32
    return %arg0, %arg1, %c0_i32 : i32, i32, i32
  }
}

</mosaic_0001>

<bundles_post_ra>
// kernel: upsampling_deconv3d.1
= control target key start
LH: loop header
LB: loop body
LE: loop exit
PB: predicated region body
PF: predicated region fallthrough
CT: control target
= control target key end

     0   :  { %s4981_s12 = smov 0   ;;  %s4983_s13 = smov 0   ;;  %s6366_s0 = inlined_call_operand.vmem [shape: f32[6,272,12], index: 0, kind: input, shape index: {}]   ;;  %s6367_s1 = inlined_call_operand.vmem [shape: f32[16,12,16], index: 1, kind: input, shape index: {}]   ;;  %s6368_s2 = inlined_call_operand.vmem [shape: f32[4,16], index: 2, kind: input, shape index: {}]   ;;  %s6369_s3 = inlined_call_operand.vmem [shape: f32[2,384,64], index: 3, kind: output, shape index: {}]  }
   0x1   :  { %s4985_s14 = smov 0   ;;  %s4987_s15 = smov 0  }
   0x2   :  { %s4989_s16 = smov 0  }
   0x3 LB: > { %s22_s17 = sadd.s32 1, %s4948_s14  ;;  %s25_s18 = sadd.s32 1, %s4952_s15  ;;  %s4956_s16 = sphi %s4989_s16, %s13_s16   ;;  %s4952_s15 = sphi %s4987_s15, %s6403_s15   ;;  %s4948_s14 = sphi %s4985_s14, %s6402_s14   ;;  %s4944_s13 = sphi %s4983_s13, %s6401_s13   ;;  %s4940_s12 = sphi %s4981_s12, %s6400_s12  }
   0x4   : > { %p23_p0 = scmp.ge.s32.totalorder %s22_s17, 3  ;;  %p3825_p1 = scmp.ge.s32.totalorder %s4956_s16, 1 }
   0x5   : > { %p159_p2 = scmp.lt.s32.totalorder %s4956_s16, 7 }
   0x6   : > { %s6405_s17 = smov (%p23_p0, %s22_s17), 0  ;;  %s6407_s18 = smov (!%p23_p0, %s25_s18), %s4952_s15 }
   0x7   : > { %p160_p3 = pnand %p3825_p1, %p159_p2  ;;  %p27_p4 = scmp.ge.s32.totalorder %s6407_s18, 2 }
   0x9   : > { %s6409_s18 = smov (%p27_p4, %s6407_s18), 0  ;;  %163 = sbr.rel (%p160_p3) target bundleno = 593 (0x251), region = 32 }
   0xe   : > { %v245_v0 = vld [vmem:[%s6367_s1 + $0x8] sm:$0xf]  ;;  %vm295_vm0 = vcmask 1043456   ;;  %v3851_v1 = vld [vmem:[%s6367_s1 + $0x18] sm:$0xf]  ;;  %v244_v2 = vld [vmem:[%s6367_s1] sm:$0xff] }
   0xf   : > { %4425 = vmatprep.subr.msk.mxu0 %vm295_vm0, %v245_v0  ;;  %4453 = vmatprep.subr.msk.mxu1 %vm295_vm0, %v3851_v1  ;;  %v3850_v3 = vld [vmem:[%s6367_s1 + $0x10] sm:$0xff]  ;;  %s189_s27 = smul.u32 3, %s4944_s13  ;;  %v3870_v4 = vld [vmem:[%s6367_s1 + $0x48] sm:$0xf]  ;;  %v3889_v5 = vld [vmem:[%s6367_s1 + $0x58] sm:$0xf] }
  0x10   : > { %4426 = vmatpush3.msk.msra.mxu0 %vm295_vm0, %v245_v0  ;;  %4454 = vmatpush3.msk.msra.mxu1 %vm295_vm0, %v3851_v1  ;;  %vm246_vm1 = vcmask 97280   ;;  %v3869_v10 = vld [vmem:[%s6367_s1 + $0x40] sm:$0xff]  ;;  %v3888_v11 = vld [vmem:[%s6367_s1 + $0x50] sm:$0xff]  ;;  %v3908_v14 = vld [vmem:[%s6367_s1 + $0x28] sm:$0xf]  ;;  %p199_p6 = scmp.lt.s32.totalorder %s4944_s13, 1 }
  0x11   : > { %4427 = vmatprep.subr.mxu0 %v244_v2  ;;  %4455 = vmatprep.subr.mxu1 %v3850_v3  ;;  %s190_s5 = sadd.s32 %s4940_s12, %s189_s27  ;;  %v3927_v15 = vld [vmem:[%s6367_s1 + $0x88] sm:$0xf]  ;;  %v3907_v27 = vld [vmem:[%s6367_s1 + $0x20] sm:$0xff]  ;;  %v3946_v29 = vld [vmem:[%s6367_s1 + $0x38] sm:$0xf]  ;;  %vm3477_vm2 = vcmask 130048  }
  0x12   : > { %4428 = vmatpush3.msra.mxu0 %v244_v2  ;;  %p191_p5 = scmp.lt.s32.totalorder %s190_s5, 5  ;;  %4456 = vmatpush3.msra.mxu1 %v3850_v3  ;;  %v3926_v28 = vld [vmem:[%s6367_s1 + $0x80] sm:$0xff]  ;;  %v3965_v30 = vld [vmem:[%s6367_s1 + $0x68] sm:$0xf]  ;;  %v3945_v32 = vld [vmem:[%s6367_s1 + $0x30] sm:$0xff]  ;;  %s6413_s13 = smov (!%p199_p6, %s4944_s13), 1 }
  0x13   : > { %4481 = vmatprep.subr.msk.mxu0 %vm295_vm0, %v3870_v4  ;;  %4509 = vmatprep.subr.msk.mxu1 %vm295_vm0, %v3889_v5  ;;  %v3964_v33 = vld [vmem:[%s6367_s1 + $0x60] sm:$0xff]  ;;  %v3984_v34 = vld [vmem:[%s6367_s1 + $0x98] sm:$0xf]  ;;  %v4003_v35 = vld [vmem:[%s6367_s1 + $0xc8] sm:$0xf]  ;;  %s4874_s8 = smul.u32 48, %s6413_s13 }
  0x14   : > { %s6411_s5 = smov (!%p191_p5, %s190_s5), 5  ;;  %v3983_v42 = vld [vmem:[%s6367_s1 + $0x90] sm:$0xff]  ;;  %v4002_v43 = vld [vmem:[%s6367_s1 + $0xc0] sm:$0xff]  ;;  %v4022_v44 = vld [vmem:[%s6367_s1 + $0x78] sm:$0xf]  ;;  %s4958_s22 = smov 16  }
  0x15   : > { %s4873_s6 = smul.u32 272, %s6411_s5  ;;  %v4041_v45 = vld [vmem:[%s6367_s1 + $0xd8] sm:$0xf]  ;;  %v4021_v47 = vld [vmem:[%s6367_s1 + $0x70] sm:$0xff]  ;;  %v4060_v49 = vld [vmem:[%s6367_s1 + $0xa8] sm:$0xf] }
  0x16   : > { %v4040_v48 = vld [vmem:[%s6367_s1 + $0xd0] sm:$0xff]  ;;  %v4079_v50 = vld [vmem:[%s6367_s1 + $0xb8] sm:$0xf]  ;;  %v4059_v51 = vld [vmem:[%s6367_s1 + $0xa0] sm:$0xff]  ;;  %s4959_s23 = smov 32   ;;  %s4960_s26 = smov 48  }
  0x17   : > { %s5044_s9 = scalar_lea.vmem %s6366_s0, %s4873_s6  ;;  %v4078_v52 = vld [vmem:[%s6367_s1 + $0xb0] sm:$0xff]  ;;  %v4098_v53 = vld [vmem:[%s6367_s1 + $0xe8] sm:$0xf]  ;;  %v4117_v54 = vld [vmem:[%s6367_s1 + $0xf8] sm:$0xf]  ;;  %vm3558_vm3 = vcmask 261248  }
  0x18   : > { %v228_v6 = vld [vmem:[%s5044_s9] sm:$0xff]  ;;  %v460_v7 = vld [vmem:[%s5044_s9 + $0x8] sm:$0xff]  ;;  %v461_v8 = vld [vmem:[%s5044_s9 + $0x10] sm:$0xff]  ;;  %vm3639_vm4 = vcmask 392448   ;;  %vm3720_vm5 = vcmask 523648  }
  0x19   : > { %4429 = vmatprep.mubr.msk.f32.mxu0 %vm246_vm1, %v228_v6  ;;  %4457 = vmatprep.mubr.msk.f32.mxu1 %vm246_vm1, %v460_v7  ;;  %v5052_v9 = vld [vmem:[%s5044_s9 + $0x18] sm:$0xff]  ;;  %v463_v12 = vld [vmem:[%s5044_s9 + $0x20] sm:$0xff]  ;;  %v464_v13 = vld [vmem:[%s5044_s9 + $0x28] sm:$0xff] }
  0x1a   : > { %4430 = vmatmul.mubr.msk.f32.vlgmr.msra.gmra.mxu0 %vm246_vm1, %v460_v7  ;;  %4458 = vmatmul.mubr.msk.f32.vlgmr.msra.gmra.mxu1 %vm246_vm1, %v461_v8  ;;  %v465_v16 = vld [vmem:[%s5044_s9 + $0x30] sm:$0xff]  ;;  %v466_v17 = vld [vmem:[%s5044_s9 + $0x38] sm:$0xff]  ;;  %v5089_v18 = vld [vmem:[%s5044_s9 + $0x40] sm:$0xff] }
  0x1b   : > { %4482 = vmatpush3.msk.msra.mxu0 %vm295_vm0, %v3870_v4  ;;  %4510 = vmatpush3.msk.msra.mxu1 %vm295_vm0, %v3889_v5  ;;  %v5092_v19 = vld [vmem:[%s5044_s9 + $0x48] sm:$0xff]  ;;  %v5102_v20 = vld [vmem:[%s5044_s9 + $0x50] sm:$0xff]  ;;  %v5105_v21 = vld [vmem:[%s5044_s9 + $0x58] sm:$0xff] }
  0x1c   : > { %4432 = vmatprep.mubr.msk.f32.mxu0 %vm246_vm1, %v461_v8  ;;  %4460 = vmatprep.mubr.msk.f32.mxu1 %vm246_vm1, %v5052_v9  ;;  %v5116_v22 = vld [vmem:[%s5044_s9 + $0x60] sm:$0xff]  ;;  %v5119_v23 = vld [vmem:[%s5044_s9 + $0x68] sm:$0xff]  ;;  %v5130_v24 = vld [vmem:[%s5044_s9 + $0x70] sm:$0xff] }
  0x1d   : > { %4483 = vmatprep.subr.mxu0 %v3869_v10  ;;  %4511 = vmatprep.subr.mxu1 %v3888_v11  ;;  %v5133_v25 = vld [vmem:[%s5044_s9 + $0x78] sm:$0xff]  ;;  %v5144_v26 = vld [vmem:[%s5044_s9 + $0x80] sm:$0xff]  ;;  %v5216_v31 = vld [vmem:[%s5044_s9 + $0x88] sm:$0xff] }
  0x1e   : > { %4433 = vmatmul.mubr.msk.f32.gmra.mxu0 %vm246_vm1, %v5052_v9  ;;  %4461 = vmatmul.mubr.msk.f32.gmra.mxu1 %vm246_vm1, %v463_v12  ;;  %v5275_v36 = vld [vmem:[%s5044_s9 + $0x90] sm:$0xff]  ;;  %v5286_v37 = vld [vmem:[%s5044_s9 + $0x98] sm:$0xff]  ;;  %v5289_v38 = vld [vmem:[%s5044_s9 + $0xa0] sm:$0xff] }
  0x1f   : > { %4435 = vmatprep.mubr.msk.f32.mxu0 %vm246_vm1, %v463_v12  ;;  %4463 = vmatprep.mubr.msk.f32.mxu1 %vm246_vm1, %v464_v13  ;;  %v5300_v39 = vld [vmem:[%s5044_s9 + $0xa8] sm:$0xff]  ;;  %v5303_v40 = vld [vmem:[%s5044_s9 + $0xb0] sm:$0xff]  ;;  %v5314_v41 = vld [vmem:[%s5044_s9 + $0xb8] sm:$0xff] }
  0x20   : > { %4484 = vmatpush3.msra.mxu0 %v3869_v10  ;;  %4512 = vmatpush3.msra.mxu1 %v3888_v11  ;;  %v5397_v46 = vld [vmem:[%s5044_s9 + $0xc0] sm:$0xff]  ;;  %v5560_v55 = vld [vmem:[%s5044_s9 + $0xc8] sm:$0xff]  ;;  %v4116_v60 = vld [vmem:[%s6367_s1 + $0xf0] sm:$0xff] }
  0x21   : > { %4537 = vmatprep.subr.msk.mxu0 %vm295_vm0, %v3908_v14  ;;  %4565 = vmatprep.subr.msk.mxu1 %vm295_vm0, %v3927_v15  ;;  %v5573_v56 = vld [vmem:[%s6368_s2] ss:$0 sm:$0xff] }
  0x22   : > { %4436 = vmatmul.mubr.msk.f32.gmra.mxu0 %vm246_vm1, %v464_v13  ;;  %4464 = vmatmul.mubr.msk.f32.gmra.mxu1 %vm246_vm1, %v465_v16  ;;  %v4097_v59 = vld [vmem:[%s6367_s1 + $0xe0] sm:$0xff] }
  0x23   : > { %4438 = vmatprep.mubr.msk.f32.mxu0 %vm246_vm1, %v465_v16  ;;  %4466 = vmatprep.mubr.msk.f32.mxu1 %vm246_vm1, %v466_v17 }
  0x26   : > { %4439 = vmatmul.mubr.msk.f32.gmra.mxu0 %vm246_vm1, %v466_v17  ;;  %4467 = vmatmul.mubr.msk.f32.gmra.mxu1 %vm246_vm1, %v5089_v18 }
  0x27   : > { %4441 = vmatprep.mubr.msk.f32.mxu0 %vm246_vm1, %v5089_v18  ;;  %4469 = vmatprep.mubr.msk.f32.mxu1 %vm246_vm1, %v5092_v19 }
  0x2a   : > { %4442 = vmatmul.mubr.msk.f32.gmra.mxu0 %vm246_vm1, %v5092_v19  ;;  %4470 = vmatmul.mubr.msk.f32.gmra.mxu1 %vm246_vm1, %v5102_v20 }
  0x2b   : > { %4444 = vmatprep.mubr.msk.f32.mxu0 %vm246_vm1, %v5102_v20  ;;  %4472 = vmatprep.mubr.msk.f32.mxu1 %vm246_vm1, %v5105_v21 }
  0x2e   : > { %4445 = vmatmul.mubr.msk.f32.gmra.mxu0 %vm246_vm1, %v5105_v21  ;;  %4473 = vmatmul.mubr.msk.f32.gmra.mxu1 %vm246_vm1, %v5116_v22 }
  0x2f   : > { %4447 = vmatprep.mubr.msk.f32.mxu0 %vm246_vm1, %v5116_v22  ;;  %4475 = vmatprep.mubr.msk.f32.mxu1 %vm246_vm1, %v5119_v23 }
  0x32   : > { %4448 = vmatmul.mubr.msk.f32.gmra.mxu0 %vm246_vm1, %v5119_v23  ;;  %4476 = vmatmul.mubr.msk.f32.gmra.mxu1 %vm246_vm1, %v5130_v24 }
  0x33   : > { %4450 = vmatprep.mubr.msk.f32.mxu0 %vm246_vm1, %v5130_v24  ;;  %4478 = vmatprep.mubr.msk.f32.mxu1 %vm246_vm1, %v5133_v25 }
  0x36   : > { %4451 = vmatmul.mubr.msk.f32.gmra.mxu0 %vm246_vm1, %v5133_v25  ;;  %4479 = vmatmul.mubr.msk.f32.gmra.mxu1 %vm246_vm1, %v5144_v26 }
  0x37   : > { %4485 = vmatprep.mubr.msk.f32.mxu0 %vm246_vm1, %v460_v7  ;;  %4513 = vmatprep.mubr.msk.f32.mxu1 %vm246_vm1, %v461_v8 }
  0x3a   : > { %4486 = vmatmul.mubr.msk.f32.vlgmr.msra.gmra.mxu0 %vm246_vm1, %v461_v8  ;;  %4514 = vmatmul.mubr.msk.f32.vlgmr.msra.gmra.mxu1 %vm246_vm1, %v5052_v9 }
  0x3b   : > { %4538 = vmatpush3.msk.msra.mxu0 %vm295_vm0, %v3908_v14  ;;  %4566 = vmatpush3.msk.msra.mxu1 %vm295_vm0, %v3927_v15 }
  0x3c   : > { %4488 = vmatprep.mubr.msk.f32.mxu0 %vm246_vm1, %v5052_v9  ;;  %4516 = vmatprep.mubr.msk.f32.mxu1 %vm246_vm1, %v463_v12 }
  0x3d   : > { %4539 = vmatprep.subr.mxu0 %v3907_v27  ;;  %4567 = vmatprep.subr.mxu1 %v3926_v28 }
  0x3e   : > { %4489 = vmatmul.mubr.msk.f32.gmra.mxu0 %vm246_vm1, %v463_v12  ;;  %4517 = vmatmul.mubr.msk.f32.gmra.mxu1 %vm246_vm1, %v464_v13 }
  0x3f   : > { %4491 = vmatprep.mubr.msk.f32.mxu0 %vm246_vm1, %v464_v13  ;;  %4519 = vmatprep.mubr.msk.f32.mxu1 %vm246_vm1, %v465_v16 }
  0x40   : > { %4540 = vmatpush3.msra.mxu0 %v3907_v27  ;;  %4568 = vmatpush3.msra.mxu1 %v3926_v28 }
  0x41   : > { %4593 = vmatprep.subr.msk.mxu0 %vm295_vm0, %v3946_v29  ;;  %4621 = vmatprep.subr.msk.mxu1 %vm295_vm0, %v3965_v30 }
  0x42   : > { %4492 = vmatmul.mubr.msk.f32.gmra.mxu0 %vm246_vm1, %v465_v16  ;;  %4520 = vmatmul.mubr.msk.f32.gmra.mxu1 %vm246_vm1, %v466_v17 }
  0x43   : > { %4494 = vmatprep.mubr.msk.f32.mxu0 %vm246_vm1, %v466_v17  ;;  %4522 = vmatprep.mubr.msk.f32.mxu1 %vm246_vm1, %v5089_v18 }
  0x46   : > { %4495 = vmatmul.mubr.msk.f32.gmra.mxu0 %vm246_vm1, %v5089_v18  ;;  %4523 = vmatmul.mubr.msk.f32.gmra.mxu1 %vm246_vm1, %v5092_v19 }
  0x47   : > { %4497 = vmatprep.mubr.msk.f32.mxu0 %vm246_vm1, %v5092_v19  ;;  %4525 = vmatprep.mubr.msk.f32.mxu1 %vm246_vm1, %v5102_v20 }
  0x4a   : > { %4498 = vmatmul.mubr.msk.f32.gmra.mxu0 %vm246_vm1, %v5102_v20  ;;  %4526 = vmatmul.mubr.msk.f32.gmra.mxu1 %vm246_vm1, %v5105_v21 }
  0x4b   : > { %4500 = vmatprep.mubr.msk.f32.mxu0 %vm246_vm1, %v5105_v21  ;;  %4528 = vmatprep.mubr.msk.f32.mxu1 %vm246_vm1, %v5116_v22 }
  0x4e   : > { %4501 = vmatmul.mubr.msk.f32.gmra.mxu0 %vm246_vm1, %v5116_v22  ;;  %4529 = vmatmul.mubr.msk.f32.gmra.mxu1 %vm246_vm1, %v5119_v23 }
  0x4f   : > { %4503 = vmatprep.mubr.msk.f32.mxu0 %vm246_vm1, %v5119_v23  ;;  %4531 = vmatprep.mubr.msk.f32.mxu1 %vm246_vm1, %v5130_v24 }
  0x52   : > { %4504 = vmatmul.mubr.msk.f32.gmra.mxu0 %vm246_vm1, %v5130_v24  ;;  %4532 = vmatmul.mubr.msk.f32.gmra.mxu1 %vm246_vm1, %v5133_v25 }
  0x53   : > { %4506 = vmatprep.mubr.msk.f32.mxu0 %vm246_vm1, %v5133_v25  ;;  %4534 = vmatprep.mubr.msk.f32.mxu1 %vm246_vm1, %v5144_v26 }
  0x56   : > { %4507 = vmatmul.mubr.msk.f32.gmra.mxu0 %vm246_vm1, %v5144_v26  ;;  %4535 = vmatmul.mubr.msk.f32.gmra.mxu1 %vm246_vm1, %v5216_v31 }
  0x57   : > { %4541 = vmatprep.mubr.msk.f32.mxu0 %vm246_vm1, %v5089_v18  ;;  %4569 = vmatprep.mubr.msk.f32.mxu1 %vm246_vm1, %v5089_v18 }
  0x5a   : > { %4542 = vmatmul.mubr.msk.f32.vlgmr.msra.gmra.mxu0 %vm246_vm1, %v5092_v19  ;;  %4570 = vmatmul.mubr.msk.f32.vlgmr.msra.gmra.mxu1 %vm246_vm1, %v5092_v19 }
  0x5b   : > { %4594 = vmatpush3.msk.msra.mxu0 %vm295_vm0, %v3946_v29  ;;  %4622 = vmatpush3.msk.msra.mxu1 %vm295_vm0, %v3965_v30 }
  0x5c   : > { %4544 = vmatprep.mubr.msk.f32.mxu0 %vm246_vm1, %v5102_v20  ;;  %4572 = vmatprep.mubr.msk.f32.mxu1 %vm246_vm1, %v5102_v20 }
  0x5d   : > { %4595 = vmatprep.subr.mxu0 %v3945_v32  ;;  %4623 = vmatprep.subr.mxu1 %v3964_v33 }
  0x5e   : > { %4545 = vmatmul.mubr.msk.f32.gmra.mxu0 %vm246_vm1, %v5105_v21  ;;  %4573 = vmatmul.mubr.msk.f32.gmra.mxu1 %vm246_vm1, %v5105_v21 }
  0x5f   : > { %4547 = vmatprep.mubr.msk.f32.mxu0 %vm246_vm1, %v5116_v22  ;;  %4575 = vmatprep.mubr.msk.f32.mxu1 %vm246_vm1, %v5116_v22 }
  0x60   : > { %4596 = vmatpush3.msra.mxu0 %v3945_v32  ;;  %4624 = vmatpush3.msra.mxu1 %v3964_v33  ;;  %v5655_v33 = vld [vmem:[%s5044_s9 + $0xe0] sm:$0xff] }
  0x61   : > { %4649 = vmatprep.subr.msk.mxu0 %vm295_vm0, %v3984_v34  ;;  %4677 = vmatprep.subr.msk.mxu1 %vm295_vm0, %v4003_v35 }
  0x62   : > { %4548 = vmatmul.mubr.msk.f32.gmra.mxu0 %vm246_vm1, %v5119_v23  ;;  %4576 = vmatmul.mubr.msk.f32.gmra.mxu1 %vm246_vm1, %v5119_v23 }
  0x63   : > { %4550 = vmatprep.mubr.msk.f32.mxu0 %vm246_vm1, %v5130_v24  ;;  %4578 = vmatprep.mubr.msk.f32.mxu1 %vm246_vm1, %v5130_v24 }
  0x66   : > { %4551 = vmatmul.mubr.msk.f32.gmra.mxu0 %vm246_vm1, %v5133_v25  ;;  %4579 = vmatmul.mubr.msk.f32.gmra.mxu1 %vm246_vm1, %v5133_v25 }
  0x67   : > { %4553 = vmatprep.mubr.msk.f32.mxu0 %vm246_vm1, %v5144_v26  ;;  %4581 = vmatprep.mubr.msk.f32.mxu1 %vm246_vm1, %v5144_v26 }
  0x6a   : > { %4554 = vmatmul.mubr.msk.f32.gmra.mxu0 %vm246_vm1, %v5216_v31  ;;  %4582 = vmatmul.mubr.msk.f32.gmra.mxu1 %vm246_vm1, %v5216_v31 }
  0x6b   : > { %4556 = vmatprep.mubr.msk.f32.mxu0 %vm246_vm1, %v5275_v36  ;;  %4584 = vmatprep.mubr.msk.f32.mxu1 %vm246_vm1, %v5275_v36 }
  0x6e   : > { %4557 = vmatmul.mubr.msk.f32.gmra.mxu0 %vm246_vm1, %v5286_v37  ;;  %4585 = vmatmul.mubr.msk.f32.gmra.mxu1 %vm246_vm1, %v5286_v37 }
  0x6f   : > { %4559 = vmatprep.mubr.msk.f32.mxu0 %vm246_vm1, %v5289_v38  ;;  %4587 = vmatprep.mubr.msk.f32.mxu1 %vm246_vm1, %v5289_v38 }
  0x72   : > { %4560 = vmatmul.mubr.msk.f32.gmra.mxu0 %vm246_vm1, %v5300_v39  ;;  %4588 = vmatmul.mubr.msk.f32.gmra.mxu1 %vm246_vm1, %v5300_v39 }
  0x73   : > { %4562 = vmatprep.mubr.msk.f32.mxu0 %vm246_vm1, %v5303_v40  ;;  %4590 = vmatprep.mubr.msk.f32.mxu1 %vm246_vm1, %v5303_v40 }
  0x76   : > { %4563 = vmatmul.mubr.msk.f32.gmra.mxu0 %vm246_vm1, %v5314_v41  ;;  %4591 = vmatmul.mubr.msk.f32.gmra.mxu1 %vm246_vm1, %v5314_v41 }
  0x77   : > { %4597 = vmatprep.mubr.msk.f32.mxu0 %vm246_vm1, %v5092_v19  ;;  %4625 = vmatprep.mubr.msk.f32.mxu1 %vm246_vm1, %v5092_v19 }
  0x7a   : > { %4598 = vmatmul.mubr.msk.f32.vlgmr.msra.gmra.mxu0 %vm246_vm1, %v5102_v20  ;;  %4626 = vmatmul.mubr.msk.f32.vlgmr.msra.gmra.mxu1 %vm246_vm1, %v5102_v20 }
  0x7b   : > { %4650 = vmatpush3.msk.msra.mxu0 %vm295_vm0, %v3984_v34  ;;  %4678 = vmatpush3.msk.msra.mxu1 %vm295_vm0, %v4003_v35 }
  0x7c   : > { %4600 = vmatprep.mubr.msk.f32.mxu0 %vm246_vm1, %v5105_v21  ;;  %4628 = vmatprep.mubr.msk.f32.mxu1 %vm246_vm1, %v5105_v21 }
  0x7d   : > { %4651 = vmatprep.subr.mxu0 %v3983_v42  ;;  %4679 = vmatprep.subr.mxu1 %v4002_v43 }
  0x7e   : > { %4601 = vmatmul.mubr.msk.f32.gmra.mxu0 %vm246_vm1, %v5116_v22  ;;  %4629 = vmatmul.mubr.msk.f32.gmra.mxu1 %vm246_vm1, %v5116_v22 }
  0x7f   : > { %4603 = vmatprep.mubr.msk.f32.mxu0 %vm246_vm1, %v5119_v23  ;;  %4631 = vmatprep.mubr.msk.f32.mxu1 %vm246_vm1, %v5119_v23 }
  0x80   : > { %4652 = vmatpush3.msra.mxu0 %v3983_v42  ;;  %4680 = vmatpush3.msra.mxu1 %v4002_v43  ;;  %v5658_v42 = vld [vmem:[%s5044_s9 + $0xe8] sm:$0xff] }
  0x81   : > { %4705 = vmatprep.subr.msk.mxu0 %vm295_vm0, %v4022_v44  ;;  %4733 = vmatprep.subr.msk.mxu1 %vm295_vm0, %v4041_v45 }
  0x82   : > { %4604 = vmatmul.mubr.msk.f32.gmra.mxu0 %vm246_vm1, %v5130_v24  ;;  %4632 = vmatmul.mubr.msk.f32.gmra.mxu1 %vm246_vm1, %v5130_v24 }
  0x83   : > { %4606 = vmatprep.mubr.msk.f32.mxu0 %vm246_vm1, %v5133_v25  ;;  %4634 = vmatprep.mubr.msk.f32.mxu1 %vm246_vm1, %v5133_v25 }
  0x86   : > { %4607 = vmatmul.mubr.msk.f32.gmra.mxu0 %vm246_vm1, %v5144_v26  ;;  %4635 = vmatmul.mubr.msk.f32.gmra.mxu1 %vm246_vm1, %v5144_v26 }
  0x87   : > { %4609 = vmatprep.mubr.msk.f32.mxu0 %vm246_vm1, %v5216_v31  ;;  %4637 = vmatprep.mubr.msk.f32.mxu1 %vm246_vm1, %v5216_v31 }
  0x8a   : > { %4610 = vmatmul.mubr.msk.f32.gmra.mxu0 %vm246_vm1, %v5275_v36  ;;  %4638 = vmatmul.mubr.msk.f32.gmra.mxu1 %vm246_vm1, %v5275_v36 }
  0x8b   : > { %4612 = vmatprep.mubr.msk.f32.mxu0 %vm246_vm1, %v5286_v37  ;;  %4640 = vmatprep.mubr.msk.f32.mxu1 %vm246_vm1, %v5286_v37 }
  0x8e   : > { %4613 = vmatmul.mubr.msk.f32.gmra.mxu0 %vm246_vm1, %v5289_v38  ;;  %4641 = vmatmul.mubr.msk.f32.gmra.mxu1 %vm246_vm1, %v5289_v38 }
  0x8f   : > { %4615 = vmatprep.mubr.msk.f32.mxu0 %vm246_vm1, %v5300_v39  ;;  %4643 = vmatprep.mubr.msk.f32.mxu1 %vm246_vm1, %v5300_v39 }
  0x92   : > { %4616 = vmatmul.mubr.msk.f32.gmra.mxu0 %vm246_vm1, %v5303_v40  ;;  %4644 = vmatmul.mubr.msk.f32.gmra.mxu1 %vm246_vm1, %v5303_v40 }
  0x93   : > { %4618 = vmatprep.mubr.msk.f32.mxu0 %vm246_vm1, %v5314_v41  ;;  %4646 = vmatprep.mubr.msk.f32.mxu1 %vm246_vm1, %v5314_v41 }
  0x96   : > { %4619 = vmatmul.mubr.msk.f32.gmra.mxu0 %vm246_vm1, %v5397_v46  ;;  %4647 = vmatmul.mubr.msk.f32.gmra.mxu1 %vm246_vm1, %v5397_v46 }
  0x97   : > { %4653 = vmatprep.mubr.msk.f32.mxu0 %vm246_vm1, %v5092_v19  ;;  %4681 = vmatprep.mubr.msk.f32.mxu1 %vm246_vm1, %v5092_v19 }
  0x9a   : > { %4654 = vmatmul.mubr.msk.f32.vlgmr.msra.gmra.mxu0 %vm246_vm1, %v5102_v20  ;;  %4682 = vmatmul.mubr.msk.f32.vlgmr.msra.gmra.mxu1 %vm246_vm1, %v5102_v20 }
  0x9b   : > { %4706 = vmatpush3.msk.msra.mxu0 %vm295_vm0, %v4022_v44  ;;  %4734 = vmatpush3.msk.msra.mxu1 %vm295_vm0, %v4041_v45 }
  0x9c   : > { %4656 = vmatprep.mubr.msk.f32.mxu0 %vm246_vm1, %v5105_v21  ;;  %4684 = vmatprep.mubr.msk.f32.mxu1 %vm246_vm1, %v5105_v21 }
  0x9d   : > { %4707 = vmatprep.subr.mxu0 %v4021_v47  ;;  %4735 = vmatprep.subr.mxu1 %v4040_v48 }
  0x9e   : > { %4657 = vmatmul.mubr.msk.f32.gmra.mxu0 %vm246_vm1, %v5116_v22  ;;  %4685 = vmatmul.mubr.msk.f32.gmra.mxu1 %vm246_vm1, %v5116_v22 }
  0x9f   : > { %4659 = vmatprep.mubr.msk.f32.mxu0 %vm246_vm1, %v5119_v23  ;;  %4687 = vmatprep.mubr.msk.f32.mxu1 %vm246_vm1, %v5119_v23 }
  0xa0   : > { %4708 = vmatpush3.msra.mxu0 %v4021_v47  ;;  %4736 = vmatpush3.msra.mxu1 %v4040_v48 }
  0xa1   : > { %4761 = vmatprep.subr.msk.mxu0 %vm295_vm0, %v4060_v49  ;;  %4789 = vmatprep.subr.msk.mxu1 %vm295_vm0, %v4079_v50 }
  0xa2   : > { %4660 = vmatmul.mubr.msk.f32.gmra.mxu0 %vm246_vm1, %v5130_v24  ;;  %4688 = vmatmul.mubr.msk.f32.gmra.mxu1 %vm246_vm1, %v5130_v24 }
  0xa3   : > { %4662 = vmatprep.mubr.msk.f32.mxu0 %vm246_vm1, %v5133_v25  ;;  %4690 = vmatprep.mubr.msk.f32.mxu1 %vm246_vm1, %v5133_v25 }
  0xa6   : > { %4663 = vmatmul.mubr.msk.f32.gmra.mxu0 %vm246_vm1, %v5144_v26  ;;  %4691 = vmatmul.mubr.msk.f32.gmra.mxu1 %vm246_vm1, %v5144_v26 }
  0xa7   : > { %4665 = vmatprep.mubr.msk.f32.mxu0 %vm246_vm1, %v5216_v31  ;;  %4693 = vmatprep.mubr.msk.f32.mxu1 %vm246_vm1, %v5216_v31 }
  0xaa   : > { %4666 = vmatmul.mubr.msk.f32.gmra.mxu0 %vm246_vm1, %v5275_v36  ;;  %4694 = vmatmul.mubr.msk.f32.gmra.mxu1 %vm246_vm1, %v5275_v36 }
  0xab   : > { %4668 = vmatprep.mubr.msk.f32.mxu0 %vm246_vm1, %v5286_v37  ;;  %4696 = vmatprep.mubr.msk.f32.mxu1 %vm246_vm1, %v5286_v37 }
  0xae   : > { %4669 = vmatmul.mubr.msk.f32.gmra.mxu0 %vm246_vm1, %v5289_v38  ;;  %4697 = vmatmul.mubr.msk.f32.gmra.mxu1 %vm246_vm1, %v5289_v38 }
  0xaf   : > { %4671 = vmatprep.mubr.msk.f32.mxu0 %vm246_vm1, %v5300_v39  ;;  %4699 = vmatprep.mubr.msk.f32.mxu1 %vm246_vm1, %v5300_v39 }
  0xb2   : > { %4672 = vmatmul.mubr.msk.f32.gmra.mxu0 %vm246_vm1, %v5303_v40  ;;  %4700 = vmatmul.mubr.msk.f32.gmra.mxu1 %vm246_vm1, %v5303_v40 }
  0xb3   : > { %4674 = vmatprep.mubr.msk.f32.mxu0 %vm246_vm1, %v5314_v41  ;;  %4702 = vmatprep.mubr.msk.f32.mxu1 %vm246_vm1, %v5314_v41 }
  0xb6   : > { %4675 = vmatmul.mubr.msk.f32.gmra.mxu0 %vm246_vm1, %v5397_v46  ;;  %4703 = vmatmul.mubr.msk.f32.gmra.mxu1 %vm246_vm1, %v5397_v46 }
  0xb7   : > { %4709 = vmatprep.mubr.msk.f32.mxu0 %vm246_vm1, %v5102_v20  ;;  %4737 = vmatprep.mubr.msk.f32.mxu1 %vm246_vm1, %v5102_v20 }
  0xba   : > { %4710 = vmatmul.mubr.msk.f32.vlgmr.msra.gmra.mxu0 %vm246_vm1, %v5105_v21  ;;  %4738 = vmatmul.mubr.msk.f32.vlgmr.msra.gmra.mxu1 %vm246_vm1, %v5105_v21 }
  0xbb   : > { %4762 = vmatpush3.msk.msra.mxu0 %vm295_vm0, %v4060_v49  ;;  %4790 = vmatpush3.msk.msra.mxu1 %vm295_vm0, %v4079_v50  ;;  %v5675_v50 = vld [vmem:[%s5044_s9 + $0xf0] sm:$0xff] }
  0xbc   : > { %4712 = vmatprep.mubr.msk.f32.mxu0 %vm246_vm1, %v5116_v22  ;;  %4740 = vmatprep.mubr.msk.f32.mxu1 %vm246_vm1, %v5116_v22  ;;  %v5635_v22 = vld [vmem:[%s5044_s9 + $0xd0] sm:$0xff] }
  0xbd   : > { %4763 = vmatprep.subr.mxu0 %v4059_v51  ;;  %4791 = vmatprep.subr.mxu1 %v4078_v52 }
  0xbe   : > { %4713 = vmatmul.mubr.msk.f32.gmra.mxu0 %vm246_vm1, %v5119_v23  ;;  %4741 = vmatmul.mubr.msk.f32.gmra.mxu1 %vm246_vm1, %v5119_v23 }
  0xbf   : > { %4715 = vmatprep.mubr.msk.f32.mxu0 %vm246_vm1, %v5130_v24  ;;  %4743 = vmatprep.mubr.msk.f32.mxu1 %vm246_vm1, %v5130_v24 }
  0xc0   : > { %4764 = vmatpush3.msra.mxu0 %v4059_v51  ;;  %4792 = vmatpush3.msra.mxu1 %v4078_v52 }
  0xc1   : > { %4817 = vmatprep.subr.msk.mxu0 %vm295_vm0, %v4098_v53  ;;  %4845 = vmatprep.subr.msk.mxu1 %vm295_vm0, %v4117_v54 }
  0xc2   : > { %4716 = vmatmul.mubr.msk.f32.gmra.mxu0 %vm246_vm1, %v5133_v25  ;;  %4744 = vmatmul.mubr.msk.f32.gmra.mxu1 %vm246_vm1, %v5133_v25  ;;  %v5638_v25 = vld [vmem:[%s5044_s9 + $0xd8] sm:$0xff] }
  0xc3   : > { %4718 = vmatprep.mubr.msk.f32.mxu0 %vm246_vm1, %v5144_v26  ;;  %4746 = vmatprep.mubr.msk.f32.mxu1 %vm246_vm1, %v5144_v26 }
  0xc6   : > { %4719 = vmatmul.mubr.msk.f32.gmra.mxu0 %vm246_vm1, %v5216_v31  ;;  %4747 = vmatmul.mubr.msk.f32.gmra.mxu1 %vm246_vm1, %v5216_v31 }
  0xc7   : > { %4721 = vmatprep.mubr.msk.f32.mxu0 %vm246_vm1, %v5275_v36  ;;  %4749 = vmatprep.mubr.msk.f32.mxu1 %vm246_vm1, %v5275_v36 }
  0xca   : > { %4722 = vmatmul.mubr.msk.f32.gmra.mxu0 %vm246_vm1, %v5286_v37  ;;  %4750 = vmatmul.mubr.msk.f32.gmra.mxu1 %vm246_vm1, %v5286_v37 }
  0xcb   : > { %4724 = vmatprep.mubr.msk.f32.mxu0 %vm246_vm1, %v5289_v38  ;;  %4752 = vmatprep.mubr.msk.f32.mxu1 %vm246_vm1, %v5289_v38 }
  0xce   : > { %4725 = vmatmul.mubr.msk.f32.gmra.mxu0 %vm246_vm1, %v5300_v39  ;;  %4753 = vmatmul.mubr.msk.f32.gmra.mxu1 %vm246_vm1, %v5300_v39 }
  0xcf   : > { %4727 = vmatprep.mubr.msk.f32.mxu0 %vm246_vm1, %v5303_v40  ;;  %4755 = vmatprep.mubr.msk.f32.mxu1 %vm246_vm1, %v5303_v40 }
  0xd2   : > { %4728 = vmatmul.mubr.msk.f32.gmra.mxu0 %vm246_vm1, %v5314_v41  ;;  %4756 = vmatmul.mubr.msk.f32.gmra.mxu1 %vm246_vm1, %v5314_v41 }
  0xd3   : > { %4730 = vmatprep.mubr.msk.f32.mxu0 %vm246_vm1, %v5397_v46  ;;  %4758 = vmatprep.mubr.msk.f32.mxu1 %vm246_vm1, %v5397_v46 }
  0xd6   : > { %4731 = vmatmul.mubr.msk.f32.gmra.mxu0 %vm246_vm1, %v5560_v55  ;;  %4759 = vmatmul.mubr.msk.f32.gmra.mxu1 %vm246_vm1, %v5560_v55 }
  0xd7   : > { %4765 = vmatprep.mubr.msk.f32.mxu0 %vm246_vm1, %v5144_v26  ;;  %4793 = vmatprep.mubr.msk.f32.mxu1 %vm246_vm1, %v5216_v31 }
  0xda   : > { %v4431_v57 = vpop.f32.mrf.mxu0  ;;  %v4459_v58 = vpop.f32.mrf.mxu1  ;;  %4766 = vmatmul.mubr.msk.f32.vlgmr.msra.gmra.mxu0 %vm246_vm1, %v5216_v31  ;;  %4794 = vmatmul.mubr.msk.f32.vlgmr.msra.gmra.mxu1 %vm246_vm1, %v5275_v36 }
  0xdb   : > { %v445_v61 = vadd.f32 %v4431_v57, %v5573_v56  ;;  %4818 = vmatpush3.msk.msra.mxu0 %vm295_vm0, %v4098_v53  ;;  %4846 = vmatpush3.msk.msra.mxu1 %vm295_vm0, %v4117_v54  ;;  %v5678_v53 = vld [vmem:[%s5044_s9 + $0xf8] sm:$0xff] }
  0xdc   : > { %v365_v62 = vpop.f32.mrf.mxu0  ;;  %v596_v63 = vpop.f32.mrf.mxu1  ;;  %4768 = vmatprep.mubr.msk.f32.mxu0 %vm246_vm1, %v5275_v36  ;;  %4796 = vmatprep.mubr.msk.f32.mxu1 %vm246_vm1, %v5286_v37 }
  0xdd   : > { %v5592_v0 = vadd.f32 %v4459_v58, %v445_v61  ;;  %v444_v1 = vadd.f32 %v5573_v56, %v365_v62  ;;  %4819 = vmatprep.subr.mxu0 %v4097_v59  ;;  %4847 = vmatprep.subr.mxu1 %v4116_v60  ;;  %v5695_v62 = vld [vmem:[%s5044_s9 + $0x100] sm:$0xff] }
  0xde   : > { %v4434_v2 = vpop.f32.mrf.mxu0  ;;  %v4462_v3 = vpop.f32.mrf.mxu1  ;;  %4769 = vmatmul.mubr.msk.f32.gmra.mxu0 %vm246_vm1, %v5286_v37  ;;  %4797 = vmatmul.mubr.msk.f32.gmra.mxu1 %vm246_vm1, %v5289_v38 }
  0xdf   : > { %v5599_v4 = vadd.f32 %v596_v63, %v444_v1  ;;  %v447_v5 = vadd.f32 %v4434_v2, %v5573_v56  ;;  %4771 = vmatprep.mubr.msk.f32.mxu0 %vm246_vm1, %v5289_v38  ;;  %4799 = vmatprep.mubr.msk.f32.mxu1 %vm246_vm1, %v5300_v39 }
  0xe0   : > { %v375_v6 = vpop.f32.mrf.mxu0  ;;  %v606_v7 = vpop.f32.mrf.mxu1  ;;  %4820 = vmatpush3.msra.mxu0 %v4097_v59  ;;  %4848 = vmatpush3.msra.mxu1 %v4116_v60 }
  0xe1   : > { %v5606_v8 = vadd.f32 %v4462_v3, %v447_v5  ;;  %v446_v9 = vadd.f32 %v5573_v56, %v375_v6 }
  0xe2   : > { %v4437_v10 = vpop.f32.mrf.mxu0  ;;  %v4465_v11 = vpop.f32.mrf.mxu1  ;;  %4772 = vmatmul.mubr.msk.f32.gmra.mxu0 %vm246_vm1, %v5300_v39  ;;  %4800 = vmatmul.mubr.msk.f32.gmra.mxu1 %vm246_vm1, %v5303_v40 }
  0xe3   : > { %v5613_v12 = vadd.f32 %v606_v7, %v446_v9  ;;  %v449_v13 = vadd.f32 %v4437_v10, %v5573_v56  ;;  %4774 = vmatprep.mubr.msk.f32.mxu0 %vm246_vm1, %v5303_v40  ;;  %4802 = vmatprep.mubr.msk.f32.mxu1 %vm246_vm1, %v5314_v41 }
  0xe4   : > { %v385_v14 = vpop.f32.mrf.mxu0  ;;  %v616_v15 = vpop.f32.mrf.mxu1 }
  0xe5   : > { %v5620_v16 = vadd.f32 %v4465_v11, %v449_v13  ;;  %v448_v17 = vadd.f32 %v5573_v56, %v385_v14  ;;  %v5714_v13 = vld [vmem:[%s6368_s2 + $0x1] ss:$0 sm:$0xff] }
  0xe6   : > { %v4440_v18 = vpop.f32.mrf.mxu0  ;;  %v4468_v19 = vpop.f32.mrf.mxu1  ;;  %4775 = vmatmul.mubr.msk.f32.gmra.mxu0 %vm246_vm1, %v5314_v41  ;;  %4803 = vmatmul.mubr.msk.f32.gmra.mxu1 %vm246_vm1, %v5397_v46 }
  0xe7   : > { %v5627_v20 = vadd.f32 %v616_v15, %v448_v17  ;;  %v451_v21 = vadd.f32 %v4440_v18, %v5573_v56  ;;  %4777 = vmatprep.mubr.msk.f32.mxu0 %vm246_vm1, %v5397_v46  ;;  %4805 = vmatprep.mubr.msk.f32.mxu1 %vm246_vm1, %v5560_v55 }
  0xe8   : > { %v395_v23 = vpop.f32.mrf.mxu0  ;;  %v626_v24 = vpop.f32.mrf.mxu1 }
  0xe9   : > { %v5640_v26 = vadd.f32 %v4468_v19, %v451_v21  ;;  %v450_v27 = vadd.f32 %v5573_v56, %v395_v23 }
  0xea   : > { %v4443_v28 = vpop.f32.mrf.mxu0  ;;  %v4471_v29 = vpop.f32.mrf.mxu1  ;;  %4778 = vmatmul.mubr.msk.f32.gmra.mxu0 %vm246_vm1, %v5560_v55  ;;  %4806 = vmatmul.mubr.msk.f32.gmra.mxu1 %vm246_vm1, %v5635_v22 }
  0xeb   : > { %v5647_v30 = vadd.f32 %v626_v24, %v450_v27  ;;  %v453_v32 = vadd.f32 %v4443_v28, %v5573_v56  ;;  %4780 = vmatprep.mubr.msk.f32.mxu0 %vm246_vm1, %v5635_v22  ;;  %4808 = vmatprep.mubr.msk.f32.mxu1 %vm246_vm1, %v5638_v25 }
  0xec   : > { %v405_v34 = vpop.f32.mrf.mxu0  ;;  %v636_v35 = vpop.f32.mrf.mxu1 }
  0xed   : > { %v5660_v43 = vadd.f32 %v4471_v29, %v453_v32  ;;  %v452_v44 = vadd.f32 %v5573_v56, %v405_v34 }
  0xee   : > { %v4446_v45 = vpop.f32.mrf.mxu0  ;;  %v4474_v47 = vpop.f32.mrf.mxu1  ;;  %4781 = vmatmul.mubr.msk.f32.gmra.mxu0 %vm246_vm1, %v5638_v25  ;;  %4809 = vmatmul.mubr.msk.f32.gmra.mxu1 %vm246_vm1, %v5655_v33 }
  0xef   : > { %v5667_v48 = vadd.f32 %v636_v35, %v452_v44  ;;  %v455_v49 = vadd.f32 %v4446_v45, %v5573_v56  ;;  %4783 = vmatprep.mubr.msk.f32.mxu0 %vm246_vm1, %v5655_v33  ;;  %4811 = vmatprep.mubr.msk.f32.mxu1 %vm246_vm1, %v5658_v42 }
  0xf0   : > { %v415_v51 = vpop.f32.mrf.mxu0  ;;  %v646_v52 = vpop.f32.mrf.mxu1 }
  0xf1   : > { %v5680_v54 = vadd.f32 %v4474_v47, %v455_v49  ;;  %v454_v57 = vadd.f32 %v5573_v56, %v415_v51 }
  0xf2   : > { %v4449_v58 = vpop.f32.mrf.mxu0  ;;  %v4477_v59 = vpop.f32.mrf.mxu1  ;;  %4784 = vmatmul.mubr.msk.f32.gmra.mxu0 %vm246_vm1, %v5658_v42  ;;  %4812 = vmatmul.mubr.msk.f32.gmra.mxu1 %vm246_vm1, %v5675_v50 }
  0xf3   : > { %v5687_v60 = vadd.f32 %v646_v52, %v454_v57  ;;  %v457_v61 = vadd.f32 %v4449_v58, %v5573_v56  ;;  %4786 = vmatprep.mubr.msk.f32.mxu0 %vm246_vm1, %v5675_v50  ;;  %4814 = vmatprep.mubr.msk.f32.mxu1 %vm246_vm1, %v5678_v53 }
  0xf4   : > { %v425_v63 = vpop.f32.mrf.mxu0  ;;  %v656_v1 = vpop.f32.mrf.mxu1 }
  0xf5   : > { %v5697_v2 = vadd.f32 %v4477_v59, %v457_v61  ;;  %v456_v3 = vadd.f32 %v5573_v56, %v425_v63 }
  0xf6   : > { %v4452_v5 = vpop.f32.mrf.mxu0  ;;  %v4480_v6 = vpop.f32.mrf.mxu1  ;;  %4787 = vmatmul.mubr.msk.f32.gmra.mxu0 %vm246_vm1, %v5678_v53  ;;  %4815 = vmatmul.mubr.msk.f32.gmra.mxu1 %vm246_vm1, %v5695_v62 }
  0xf7   : > { %v5704_v7 = vadd.f32 %v656_v1, %v456_v3  ;;  %v459_v9 = vadd.f32 %v4452_v5, %v5573_v56  ;;  %4821 = vmatprep.mubr.msk.f32.mxu0 %vm246_vm1, %v5216_v31  ;;  %4849 = vmatprep.mubr.msk.f32.mxu1 %vm246_vm1, %v5275_v36 }
  0xf8   : > { %v435_v10 = vpop.f32.mrf.mxu0  ;;  %v666_v11 = vpop.f32.mrf.mxu1 }
  0xf9   : > { %v5716_v14 = vadd.f32 %v4480_v6, %v459_v9  ;;  %v458_v15 = vadd.f32 %v5573_v56, %v435_v10 }
  0xfa   : > { %v4487_v17 = vpop.f32.mrf.mxu0  ;;  %v4515_v18 = vpop.f32.mrf.mxu1  ;;  %4822 = vmatmul.mubr.msk.f32.vlgmr.msra.gmra.mxu0 %vm246_vm1, %v5275_v36  ;;  %4850 = vmatmul.mubr.msk.f32.vlgmr.msra.gmra.mxu1 %vm246_vm1, %v5286_v37 }
  0xfb   : > { %v5723_v31 = vadd.f32 %v666_v11, %v458_v15  ;;  %v843_v19 = vadd.f32 %v4487_v17, %v5714_v13  ;;  %4824 = vmatprep.mubr.msk.f32.mxu0 %vm246_vm1, %v5286_v37  ;;  %4852 = vmatprep.mubr.msk.f32.mxu1 %vm246_vm1, %v5289_v38 }
  0xfc   : > { %v763_v21 = vpop.f32.mrf.mxu0  ;;  %v994_v56 = vpop.f32.mrf.mxu1 }
  0xfd   : > { %v5730_v23 = vadd.f32 %v4515_v18, %v843_v19  ;;  %v842_v24 = vadd.f32 %v5714_v13, %v763_v21 }
  0xfe   : > { %v4490_v36 = vpop.f32.mrf.mxu0  ;;  %v4518_v27 = vpop.f32.mrf.mxu1  ;;  %4825 = vmatmul.mubr.msk.f32.gmra.mxu0 %vm246_vm1, %v5289_v38  ;;  %4853 = vmatmul.mubr.msk.f32.gmra.mxu1 %vm246_vm1, %v5300_v39 }
  0xff   : > { %v5737_v28 = vadd.f32 %v994_v56, %v842_v24  ;;  %v845_v37 = vadd.f32 %v4490_v36, %v5714_v13  ;;  %4827 = vmatprep.mubr.msk.f32.mxu0 %vm246_vm1, %v5300_v39  ;;  %4855 = vmatprep.mubr.msk.f32.mxu1 %vm246_vm1, %v5303_v40 }
 0x100   : > { %v773_v29 = vpop.f32.mrf.mxu0  ;;  %v1004_v32 = vpop.f32.mrf.mxu1 }
 0x101   : > { %v5744_v34 = vadd.f32 %v4518_v27, %v845_v37  ;;  %v844_v35 = vadd.f32 %v5714_v13, %v773_v29  ;;  %v3261_v27 = vld [vmem:[%s5044_s9 + $0x108] sm:$0xff]  ;;  %s3827_s9 = sshll.u32 %s4940_s12, 4 }
 0x102   : > { %v4493_v38 = vpop.f32.mrf.mxu0  ;;  %v4521_v44 = vpop.f32.mrf.mxu1  ;;  %4828 = vmatmul.mubr.msk.f32.gmra.mxu0 %vm246_vm1, %v5303_v40  ;;  %4856 = vmatmul.mubr.msk.f32.gmra.mxu1 %vm246_vm1, %v5314_v41  ;;  %p201_p7 = scmp.lt.s32.totalorder %s3827_s9, 47 }
 0x103   : > { %v5751_v45 = vadd.f32 %v1004_v32, %v844_v35  ;;  %v847_v39 = vadd.f32 %v4493_v38, %v5714_v13  ;;  %4830 = vmatprep.mubr.msk.f32.mxu0 %vm246_vm1, %v5314_v41  ;;  %4858 = vmatprep.mubr.msk.f32.mxu1 %vm246_vm1, %v5397_v46 }
 0x104   : > { %v783_v47 = vpop.f32.mrf.mxu0  ;;  %v1014_v49 = vpop.f32.mrf.mxu1  ;;  %s6415_s9 = smov (!%p201_p7, %s3827_s9), 47 }
 0x105   : > { %v5758_v51 = vadd.f32 %v4521_v44, %v847_v39  ;;  %v846_v52 = vadd.f32 %v5714_v13, %v783_v47  ;;  %s204_s12 = sadd.s32 %s4874_s8, %s6415_s9 }
 0x106   : > { %v4496_v40 = vpop.f32.mrf.mxu0  ;;  %v4524_v57 = vpop.f32.mrf.mxu1  ;;  %4831 = vmatmul.mubr.msk.f32.gmra.mxu0 %vm246_vm1, %v5397_v46  ;;  %4859 = vmatmul.mubr.msk.f32.gmra.mxu1 %vm246_vm1, %v5560_v55  ;;  %s3828_s10 = sshll.u32 %s204_s12, 3 }
 0x107   : > { %v5765_v58 = vadd.f32 %v1014_v49, %v846_v52  ;;  %v849_v41 = vadd.f32 %v4496_v40, %v5714_v13  ;;  %4833 = vmatprep.mubr.msk.f32.mxu0 %vm246_vm1, %v5560_v55  ;;  %4861 = vmatprep.mubr.msk.f32.mxu1 %vm246_vm1, %v5635_v22  ;;  %s5884_s19 = scalar_lea.vmem %s6369_s3, %s3828_s10 }
 0x108   : > { %v793_v59 = vpop.f32.mrf.mxu0  ;;  %v1024_v61 = vpop.f32.mrf.mxu1 }
 0x109   : > { %v5772_v63 = vadd.f32 %v4524_v57, %v849_v41  ;;  %v848_v1 = vadd.f32 %v5714_v13, %v793_v59 }
 0x10a   : > { %v4499_v46 = vpop.f32.mrf.mxu0  ;;  %v4527_v3 = vpop.f32.mrf.mxu1  ;;  %4834 = vmatmul.mubr.msk.f32.gmra.mxu0 %vm246_vm1, %v5635_v22  ;;  %4862 = vmatmul.mubr.msk.f32.gmra.mxu1 %vm246_vm1, %v5638_v25 }
 0x10b   : > { %v5779_v5 = vadd.f32 %v1024_v61, %v848_v1  ;;  %v851_v55 = vadd.f32 %v4499_v46, %v5714_v13  ;;  %4836 = vmatprep.mubr.msk.f32.mxu0 %vm246_vm1, %v5638_v25  ;;  %4864 = vmatprep.mubr.msk.f32.mxu1 %vm246_vm1, %v5655_v33 }
 0x10c   : > { %v803_v6 = vpop.f32.mrf.mxu0  ;;  %v1034_v9 = vpop.f32.mrf.mxu1 }
 0x10d   : > { %v5786_v10 = vadd.f32 %v4527_v3, %v851_v55  ;;  %v850_v11 = vadd.f32 %v5714_v13, %v803_v6 }
 0x10e   : > { %v4502_v22 = vpop.f32.mrf.mxu0  ;;  %v4530_v15 = vpop.f32.mrf.mxu1  ;;  %4837 = vmatmul.mubr.msk.f32.gmra.mxu0 %vm246_vm1, %v5655_v33  ;;  %4865 = vmatmul.mubr.msk.f32.gmra.mxu1 %vm246_vm1, %v5658_v42 }
 0x10f   : > { %v5793_v17 = vadd.f32 %v1034_v9, %v850_v11  ;;  %v853_v25 = vadd.f32 %v4502_v22, %v5714_v13  ;;  %4839 = vmatprep.mubr.msk.f32.mxu0 %vm246_vm1, %v5658_v42  ;;  %4867 = vmatprep.mubr.msk.f32.mxu1 %vm246_vm1, %v5675_v50 }
 0x110   : > { %v813_v18 = vpop.f32.mrf.mxu0  ;;  %v1044_v19 = vpop.f32.mrf.mxu1 }
 0x111   : > { %v5800_v21 = vadd.f32 %v4530_v15, %v853_v25  ;;  %v852_v33 = vadd.f32 %v5714_v13, %v813_v18 }
 0x112   : > { %v4505_v56 = vpop.f32.mrf.mxu0  ;;  %v4533_v24 = vpop.f32.mrf.mxu1  ;;  %4840 = vmatmul.mubr.msk.f32.gmra.mxu0 %vm246_vm1, %v5675_v50  ;;  %4868 = vmatmul.mubr.msk.f32.gmra.mxu1 %vm246_vm1, %v5678_v53 }
 0x113   : > { %v5807_v36 = vadd.f32 %v1044_v19, %v852_v33  ;;  %v855_v42 = vadd.f32 %v4505_v56, %v5714_v13  ;;  %4842 = vmatprep.mubr.msk.f32.mxu0 %vm246_vm1, %v5678_v53  ;;  %4870 = vmatprep.mubr.msk.f32.mxu1 %vm246_vm1, %v5695_v62 }
 0x114   : > { %v823_v37 = vpop.f32.mrf.mxu0  ;;  %v1054_v29 = vpop.f32.mrf.mxu1 }
 0x115   : > { %6370 = vst [vmem:[#allocation2_spill] sm:$0xff] %v5807_v36  ;;  %v5815_v32 = vadd.f32 %v4533_v24, %v855_v42  ;;  %v854_v50 = vadd.f32 %v5714_v13, %v823_v37 }
 0x116   : > { %v4508_v35 = vpop.f32.mrf.mxu0  ;;  %v4536_v38 = vpop.f32.mrf.mxu1  ;;  %4843 = vmatmul.mubr.msk.f32.gmra.mxu0 %vm246_vm1, %v5695_v62  ;;  %4871 = vmatmul.mubr.msk.f32.gmra.mxu1 %vm246_vm1, %v3261_v27 }
 0x117   : > { %v5821_v44 = vadd.f32 %v1054_v29, %v854_v50  ;;  %v857_v53 = vadd.f32 %v4508_v35, %v5714_v13 }
 0x118   : > { %v833_v39 = vpop.f32.mrf.mxu0  ;;  %v1064_v47 = vpop.f32.mrf.mxu1 }
 0x119   : > { %6371 = vst [vmem:[#allocation3_spill] sm:$0xff] %v5821_v44  ;;  %v5824_v49 = vadd.f32 %v4536_v38, %v857_v53  ;;  %v856_v52 = vadd.f32 %v5714_v13, %v833_v39 }
 0x11a   : > { %v4543_v40 = vpop.f32.mrf.mxu0  ;;  %v5827_v57 = vpop.f32.mrf.mxu1 }
 0x11b   : > { %v5829_v41 = vadd.f32 %v1064_v47, %v856_v52 }
 0x11c   : > { %v1225_v62 = vpop.f32.mrf.mxu0  ;;  %v5831_v59 = vpop.f32.mrf.mxu1 }
 0x11d   : > { %6372 = vst [vmem:[#allocation4_spill] sm:$0xff] %v5829_v41  ;;  %6373 = vst [vmem:[#allocation5_spill] sm:$0xff] %v5831_v59 }
 0x11e   : > { %v4546_v61 = vpop.f32.mrf.mxu0  ;;  %v5833_v1 = vpop.f32.mrf.mxu1 }
 0x120   : > { %v1235_v46 = vpop.f32.mrf.mxu0  ;;  %v5835_v3 = vpop.f32.mrf.mxu1 }
 0x121   : > { %6374 = vst [vmem:[#allocation6_spill] sm:$0xff] %v5835_v3  ;;  %v1306_v44 = vadd.f32 %v1235_v46, %v5613_v12 }
 0x122   : > { %v4549_v55 = vpop.f32.mrf.mxu0  ;;  %v5837_v6 = vpop.f32.mrf.mxu1 }
 0x124   : > { %v1245_v13 = vpop.f32.mrf.mxu0  ;;  %v5839_v9 = vpop.f32.mrf.mxu1 }
 0x125   : > { %6375 = vst [vmem:[#allocation7_spill] sm:$0xff] %v5839_v9 }
 0x126   : > { %v4552_v11 = vpop.f32.mrf.mxu0  ;;  %v5841_v22 = vpop.f32.mrf.mxu1 }
 0x128   : > { %v1255_v15 = vpop.f32.mrf.mxu0  ;;  %v5844_v25 = vpop.f32.mrf.mxu1 }
 0x129   : > { %6376 = vst [vmem:[#allocation8_spill] sm:$0xff] %v5844_v25  ;;  %v1304_v25 = vadd.f32 %v1225_v62, %v5599_v4 }
 0x12a   : > { %v5847_v18 = vpop.f32.mrf.mxu0  ;;  %v5849_v19 = vpop.f32.mrf.mxu1 }
 0x12c   : > { %v5852_v33 = vpop.f32.mrf.mxu0  ;;  %v5854_v56 = vpop.f32.mrf.mxu1 }
 0x12d   : > { %6377 = vst [vmem:[#allocation9_spill] sm:$0xff] %v5854_v56 }
 0x12e   : > { %v5856_v24 = vpop.f32.mrf.mxu0  ;;  %v5858_v42 = vpop.f32.mrf.mxu1 }
 0x130   : > { %v5860_v27 = vpop.f32.mrf.mxu0  ;;  %v5862_v37 = vpop.f32.mrf.mxu1 }
 0x131   : > { %6378 = vst [vmem:[#allocation10_spill] sm:$0xff] %v5862_v37  ;;  %v1305_v37 = vadd.f32 %v4543_v40, %v5592_v0  ;;  %v1307_v0 = vadd.f32 %v4546_v61, %v5606_v8 }
 0x132   : > { %v5864_v29 = vpop.f32.mrf.mxu0  ;;  %v5866_v50 = vpop.f32.mrf.mxu1 }
 0x134   : > { %v5868_v35 = vpop.f32.mrf.mxu0  ;;  %v5870_v38 = vpop.f32.mrf.mxu1 }
 0x135   : > { %6379 = vst [vmem:[#allocation11_spill] sm:$0xff] %v5870_v38 }
 0x136   : > { %v5872_v53 = vpop.f32.mrf.mxu0  ;;  %v5874_v39 = vpop.f32.mrf.mxu1 }
 0x138   : > { %v5876_v47 = vpop.f32.mrf.mxu0  ;;  %v5878_v52 = vpop.f32.mrf.mxu1 }
 0x139   : > { %6380 = vst [vmem:[#allocation12_spill] sm:$0xff] %v5878_v52 }
 0x13a   : > { %v4599_v38 = vpop.f32.mrf.mxu0  ;;  %v5886_v56 = vpop.f32.mrf.mxu1 }
 0x13b   : > { %v1703_v9 = vadd.f32 %v4599_v38, %v1305_v37  ;;  %v1309_v37 = vadd.f32 %v4549_v55, %v5620_v16  ;;  %v1311_v16 = vadd.f32 %v4552_v11, %v5640_v26  ;;  %v1313_v26 = vadd.f32 %v5847_v18, %v5660_v43 }
 0x13c   : > { %v1623_v3 = vpop.f32.mrf.mxu0  ;;  %v5889_v59 = vpop.f32.mrf.mxu1  ;;  %v1315_v43 = vadd.f32 %v5856_v24, %v5680_v54  ;;  %v1317_v54 = vadd.f32 %v5864_v29, %v5697_v2  ;;  %v1319_v2 = vadd.f32 %v5872_v53, %v5716_v14 }
 0x13d   : > { %3479 = vst.msk [vmem:[%s5884_s19 + $0x8] sm:$0xff] %vm3477_vm2, %v1703_v9  ;;  %v1702_v40 = vadd.f32 %v1623_v3, %v1304_v25  ;;  %v1308_v9 = vadd.f32 %v1245_v13, %v5627_v20  ;;  %v1310_v20 = vadd.f32 %v1255_v15, %v5647_v30  ;;  %v1312_v30 = vadd.f32 %v5852_v33, %v5667_v48 }
 0x13e   : > { %v4602_v52 = vpop.f32.mrf.mxu0  ;;  %v5894_v41 = vpop.f32.mrf.mxu1  ;;  %v1314_v48 = vadd.f32 %v5860_v27, %v5687_v60  ;;  %v1316_v60 = vadd.f32 %v5868_v35, %v5704_v7  ;;  %v5969_v7 = vld [vmem:[%s6368_s2 + $0x2] ss:$0 sm:$0xff] }
 0x13f   : > { %3478 = vst.msk [vmem:[%s5884_s19] sm:$0xff] %vm3477_vm2, %v1702_v40  ;;  %v1705_v36 = vadd.f32 %v4602_v52, %v1307_v0 }
 0x140   : > { %v1633_v4 = vpop.f32.mrf.mxu0  ;;  %v5899_v62 = vpop.f32.mrf.mxu1 }
 0x141   : > { %3481 = vst.msk [vmem:[%s5884_s19 + $0x18] sm:$0xff] %vm3477_vm2, %v1705_v36  ;;  %v1704_v8 = vadd.f32 %v1633_v4, %v1306_v44 }
 0x142   : > { %v4605_v61 = vpop.f32.mrf.mxu0  ;;  %v4633_v3 = vpop.f32.mrf.mxu1 }
 0x143   : > { %3480 = vst.msk [vmem:[%s5884_s19 + $0x10] sm:$0xff] %vm3477_vm2, %v1704_v8  ;;  %v1707_v12 = vadd.f32 %v4605_v61, %v1309_v37  ;;  %v5908_v46 = vadd.f32 %v4633_v3, %v5758_v51 }
 0x144   : > { %v1643_v25 = vpop.f32.mrf.mxu0  ;;  %v5910_v38 = vpop.f32.mrf.mxu1 }
 0x145   : > { %3483 = vst.msk [vmem:[%s5884_s19 + $0x28] sm:$0xff] %vm3477_vm2, %v1707_v12  ;;  %v1706_v36 = vadd.f32 %v1643_v25, %v1308_v9 }
 0x146   : > { %v4608_v44 = vpop.f32.mrf.mxu0  ;;  %v4636_v55 = vpop.f32.mrf.mxu1 }
 0x147   : > { %3482 = vst.msk [vmem:[%s5884_s19 + $0x20] sm:$0xff] %vm3477_vm2, %v1706_v36  ;;  %v1709_v13 = vadd.f32 %v4608_v44, %v1311_v16  ;;  %v5919_v51 = vadd.f32 %v4636_v55, %v5772_v63 }
 0x148   : > { %v1653_v52 = vpop.f32.mrf.mxu0  ;;  %v5921_v0 = vpop.f32.mrf.mxu1 }
 0x149   : > { %3485 = vst.msk [vmem:[%s5884_s19 + $0x38] sm:$0xff] %vm3477_vm2, %v1709_v13  ;;  %v1708_v11 = vadd.f32 %v1653_v52, %v1310_v20  ;;  %v1472_v52 = vadd.f32 %v5827_v57, %v5969_v7 }
 0x14a   : > { %v4611_v40 = vpop.f32.mrf.mxu0  ;;  %v4639_v4 = vpop.f32.mrf.mxu1 }
 0x14b   : > { %3484 = vst.msk [vmem:[%s5884_s19 + $0x30] sm:$0xff] %vm3477_vm2, %v1708_v11  ;;  %v1711_v15 = vadd.f32 %v4611_v40, %v1313_v26  ;;  %v5932_v63 = vadd.f32 %v4639_v4, %v5786_v10  ;;  %v1474_v4 = vadd.f32 %v5833_v1, %v5969_v7 }
 0x14c   : > { %v1663_v37 = vpop.f32.mrf.mxu0  ;;  %v5934_v8 = vpop.f32.mrf.mxu1 }
 0x14d   : > { %3487 = vst.msk [vmem:[%s5884_s19 + $0x48] sm:$0xff] %vm3477_vm2, %v1711_v15  ;;  %v1710_v18 = vadd.f32 %v1663_v37, %v1312_v30 }
 0x14e   : > { %v4614_v61 = vpop.f32.mrf.mxu0  ;;  %v4642_v3 = vpop.f32.mrf.mxu1 }
 0x14f   : > { %3486 = vst.msk [vmem:[%s5884_s19 + $0x40] sm:$0xff] %vm3477_vm2, %v1710_v18  ;;  %v1713_v33 = vadd.f32 %v4614_v61, %v1315_v43  ;;  %v5945_v10 = vadd.f32 %v4642_v3, %v5800_v21  ;;  %v1476_v18 = vadd.f32 %v5837_v6, %v5969_v7 }
 0x150   : > { %v1673_v9 = vpop.f32.mrf.mxu0  ;;  %v5947_v12 = vpop.f32.mrf.mxu1 }
 0x151   : > { %3489 = vst.msk [vmem:[%s5884_s19 + $0x58] sm:$0xff] %vm3477_vm2, %v1713_v33  ;;  %v1712_v24 = vadd.f32 %v1673_v9, %v1314_v48  ;;  %v1478_v9 = vadd.f32 %v5841_v22, %v5969_v7 }
 0x152   : > { %v4617_v25 = vpop.f32.mrf.mxu0  ;;  %v4645_v16 = vpop.f32.mrf.mxu1 }
 0x153   : > { %3488 = vst.msk [vmem:[%s5884_s19 + $0x50] sm:$0xff] %vm3477_vm2, %v1712_v24  ;;  %v1715_v27 = vadd.f32 %v4617_v25, %v1317_v54  ;;  %v5958_v21 = vadd.f32 %v4645_v16, %v5815_v32  ;;  %v1318_v32 = vadd.f32 %v5876_v47, %v5723_v31 }
 0x154   : > { %v1683_v36 = vpop.f32.mrf.mxu0  ;;  %v5960_v44 = vpop.f32.mrf.mxu1 }
 0x155   : > { %3491 = vst.msk [vmem:[%s5884_s19 + $0x68] sm:$0xff] %vm3477_vm2, %v1715_v27  ;;  %v1714_v29 = vadd.f32 %v1683_v36, %v1316_v60  ;;  %v1480_v60 = vadd.f32 %v5849_v19, %v5969_v7 }
 0x156   : > { %v4620_v35 = vpop.f32.mrf.mxu0  ;;  %v4648_v55 = vpop.f32.mrf.mxu1 }
 0x157   : > { %3490 = vst.msk [vmem:[%s5884_s19 + $0x60] sm:$0xff] %vm3477_vm2, %v1714_v29  ;;  %v1717_v20 = vadd.f32 %v4620_v35, %v1319_v2  ;;  %v5976_v13 = vadd.f32 %v4648_v55, %v5824_v49  ;;  %v1482_v35 = vadd.f32 %v5858_v42, %v5969_v7 }
 0x158   : > { %v1693_v14 = vpop.f32.mrf.mxu0  ;;  %v5978_v53 = vpop.f32.mrf.mxu1 }
 0x159   : > { %3493 = vst.msk [vmem:[%s5884_s19 + $0x78] sm:$0xff] %vm3477_vm2, %v1717_v20  ;;  %v1716_v26 = vadd.f32 %v1693_v14, %v1318_v32 }
 0x15a   : > { %v4655_v11 = vpop.f32.mrf.mxu0  ;;  %v5984_v40 = vpop.f32.mrf.mxu1 }
 0x15b   : > { %3492 = vst.msk [vmem:[%s5884_s19 + $0x70] sm:$0xff] %vm3477_vm2, %v1716_v26  ;;  %v5988_v31 = vadd.f32 %v4655_v11, %v1472_v52  ;;  %v1484_v52 = vadd.f32 %v5866_v50, %v5969_v7 }
 0x15c   : > { %v5990_v47 = vpop.f32.mrf.mxu0  ;;  %v5992_v49 = vpop.f32.mrf.mxu1 }
 0x15e   : > { %v4658_v30 = vpop.f32.mrf.mxu0  ;;  %v5996_v15 = vpop.f32.mrf.mxu1 }
 0x15f   : > { %v5998_v57 = vadd.f32 %v4658_v30, %v1474_v4 }
 0x160   : > { %v6000_v37 = vpop.f32.mrf.mxu0  ;;  %v6002_v43 = vpop.f32.mrf.mxu1 }
 0x162   : > { %v4661_v61 = vpop.f32.mrf.mxu0  ;;  %v6006_v3 = vpop.f32.mrf.mxu1 }
 0x163   : > { %v6008_v48 = vadd.f32 %v4661_v61, %v1476_v18  ;;  %v1486_v18 = vadd.f32 %v5874_v39, %v5969_v7  ;;  %v1869_v39 = vadd.f32 %v5889_v59, %v5737_v28 }
 0x164   : > { %v6010_v33 = vpop.f32.mrf.mxu0  ;;  %v6012_v1 = vpop.f32.mrf.mxu1 }
 0x166   : > { %v4664_v54 = vpop.f32.mrf.mxu0  ;;  %v6016_v24 = vpop.f32.mrf.mxu1 }
 0x167   : > { %v6018_v25 = vadd.f32 %v4664_v54, %v1478_v9 }
 0x168   : > { %v6020_v16 = vpop.f32.mrf.mxu0  ;;  %v6022_v6 = vpop.f32.mrf.mxu1 }
 0x16a   : > { %v4667_v27 = vpop.f32.mrf.mxu0  ;;  %v6026_v36 = vpop.f32.mrf.mxu1 }
 0x16b   : > { %v6028_v2 = vadd.f32 %v4667_v27, %v1480_v60  ;;  %v1870_v27 = vadd.f32 %v5886_v56, %v5730_v23 }
 0x16c   : > { %v6030_v29 = vpop.f32.mrf.mxu0  ;;  %v6032_v22 = vpop.f32.mrf.mxu1 }
 0x16e   : > { %v4670_v55 = vpop.f32.mrf.mxu0  ;;  %v6036_v32 = vpop.f32.mrf.mxu1 }
 0x16f   : > { %v6038_v20 = vadd.f32 %v4670_v55, %v1482_v35 }
 0x170   : > { %v6040_v14 = vpop.f32.mrf.mxu0  ;;  %v6042_v19 = vpop.f32.mrf.mxu1 }
 0x172   : > { %v4673_v26 = vpop.f32.mrf.mxu0  ;;  %v6046_v11 = vpop.f32.mrf.mxu1 }
 0x173   : > { %6381 = vst [vmem:[#allocation13_spill] sm:$0xff] %v6046_v11  ;;  %v6048_v4 = vadd.f32 %v4673_v26, %v1484_v52 }
 0x174   : > { %v6050_v30 = vpop.f32.mrf.mxu0  ;;  %v6052_v42 = vpop.f32.mrf.mxu1 }
 0x175   : > { %6382 = vst [vmem:[#allocation14_spill] sm:$0xff] %v6052_v42 }
 0x176   : > { %v4676_v61 = vpop.f32.mrf.mxu0  ;;  %v6056_v9 = vpop.f32.mrf.mxu1 }
 0x177   : > { %6383 = vst [vmem:[#allocation15_spill] sm:$0xff] %v6056_v9  ;;  %v6058_v54 = vadd.f32 %v4676_v61, %v1486_v18  ;;  %v1872_v18 = vadd.f32 %v5894_v41, %v5744_v34  ;;  %v1873_v41 = vadd.f32 %v5910_v38, %v5765_v58 }
 0x178   : > { %v6060_v60 = vpop.f32.mrf.mxu0  ;;  %v6062_v50 = vpop.f32.mrf.mxu1 }
 0x179   : > { %6384 = vst [vmem:[#allocation16_spill] sm:$0xff] %v6062_v50 }
 0x17a   : > { %v4711_v35 = vpop.f32.mrf.mxu0  ;;  %v6066_v55 = vpop.f32.mrf.mxu1 }
 0x17b   : > { %v2435_v52 = vadd.f32 %v4711_v35, %v1870_v27  ;;  %v1871_v27 = vadd.f32 %v5899_v62, %v5751_v45  ;;  %v1875_v45 = vadd.f32 %v5921_v0, %v5779_v5 }
 0x17c   : > { %v2355_v26 = vpop.f32.mrf.mxu0  ;;  %v6068_v42 = vpop.f32.mrf.mxu1 }
 0x17d   : > { %3512 = vrot.lane.b32.xlu0 %v2435_v52, %s4958_s22  ;;  %v2434_v23 = vadd.f32 %v2355_v26, %v1869_v39 }
 0x17e   : > { %v4714_v61 = vpop.f32.mrf.mxu0  ;;  %v6075_v50 = vpop.f32.mrf.mxu1 }
 0x17f   : > { %v2437_v56 = vadd.f32 %v4714_v61, %v1872_v18 }
 0x180   : > { %v2365_v9 = vpop.f32.mrf.mxu0  ;;  %v6077_v11 = vpop.f32.mrf.mxu1 }
 0x181   : > { %3510 = vrot.lane.b32.xlu0 %v2434_v23, %s4958_s22  ;;  %3516 = vrot.lane.b32.xlu1 %v2437_v56, %s4958_s22  ;;  %v2436_v59 = vadd.f32 %v2365_v9, %v1871_v27  ;;  %v1877_v56 = vadd.f32 %v5934_v8, %v5793_v17 }
 0x182   : > { %v4717_v28 = vpop.f32.mrf.mxu0  ;;  %v6083_v34 = vpop.f32.mrf.mxu1 }
 0x183   : > { %v2439_v62 = vadd.f32 %v4717_v28, %v5908_v46 }
 0x184   : > { %v2375_v35 = vpop.f32.mrf.mxu0  ;;  %v6087_v52 = vpop.f32.mrf.mxu1 }
 0x185   : > { %v2438_v26 = vadd.f32 %v2375_v35, %v1873_v41  ;;  %3514 = vrot.lane.b32.xlu1 %v2436_v59, %s4958_s22  ;;  %v6385_v59 = vld [vmem:[#allocation2_spill] sm:$0xff] }
 0x186   : > { %v4720_v39 = vpop.f32.mrf.mxu0  ;;  %v6090_v18 = vpop.f32.mrf.mxu1  ;;  %v1879_v35 = vadd.f32 %v5947_v12, %v6385_v59 }
 0x187   : > { %3518 = vrot.lane.b32.xlu0 %v2438_v26, %s4958_s22  ;;  %v2441_v27 = vadd.f32 %v4720_v39, %v5919_v51 }
 0x188   : > { %v2385_v61 = vpop.f32.mrf.mxu0  ;;  %v6096_v23 = vpop.f32.mrf.mxu1 }
 0x189   : > { %v2440_v58 = vadd.f32 %v2385_v61, %v1875_v45  ;;  %3520 = vrot.lane.b32.xlu1 %v2439_v62, %s4958_s22  ;;  %v6386_v62 = vld [vmem:[#allocation3_spill] sm:$0xff] }
 0x18a   : > { %v4723_v38 = vpop.f32.mrf.mxu0  ;;  %v6099_v9 = vpop.f32.mrf.mxu1  ;;  %v1881_v61 = vadd.f32 %v5960_v44, %v6386_v62 }
 0x18b   : > { %3522 = vrot.lane.b32.xlu0 %v2440_v58, %s4958_s22  ;;  %v2443_v26 = vadd.f32 %v4723_v38, %v5932_v63 }
 0x18c   : > { %v2395_v5 = vpop.f32.mrf.mxu0  ;;  %v6105_v46 = vpop.f32.mrf.mxu1 }
 0x18d   : > { %v2442_v0 = vadd.f32 %v2395_v5, %v1877_v56  ;;  %3524 = vrot.lane.b32.xlu1 %v2441_v27, %s4958_s22  ;;  %v6387_v5 = vld [vmem:[#allocation4_spill] sm:$0xff] }
 0x18e   : > { %v4726_v28 = vpop.f32.mrf.mxu0  ;;  %v6108_v41 = vpop.f32.mrf.mxu1 }
 0x18f   : > { %3526 = vrot.lane.b32.xlu0 %v2442_v0, %s4958_s22  ;;  %v2445_v58 = vadd.f32 %v4726_v28, %v5945_v10  ;;  %v1883_v0 = vadd.f32 %v5978_v53, %v6387_v5  ;;  %v6388_v28 = vld [vmem:[#allocation5_spill] sm:$0xff] }
 0x190   : > { %v2405_v17 = vpop.f32.mrf.mxu0  ;;  %v6114_v51 = vpop.f32.mrf.mxu1 }
 0x191   : > { %v2444_v8 = vadd.f32 %v2405_v17, %v1879_v35  ;;  %3528 = vrot.lane.b32.xlu1 %v2443_v26, %s4958_s22  ;;  %v1471_v35 = vadd.f32 %v5969_v7, %v6388_v28  ;;  %v6390_v28 = vld [vmem:[#allocation7_spill] sm:$0xff] }
 0x192   : > { %v4729_v39 = vpop.f32.mrf.mxu0  ;;  %v6117_v45 = vpop.f32.mrf.mxu1 }
 0x193   : > { %3530 = vrot.lane.b32.xlu0 %v2444_v8, %s4958_s22  ;;  %v2447_v59 = vadd.f32 %v4729_v39, %v5958_v21  ;;  %v2036_v62 = vadd.f32 %v5990_v47, %v1471_v35  ;;  %v1475_v35 = vadd.f32 %v5969_v7, %v6390_v28 }
 0x194   : > { %v2415_v12 = vpop.f32.mrf.mxu0  ;;  %v6123_v63 = vpop.f32.mrf.mxu1 }
 0x195   : > { %v2446_v38 = vadd.f32 %v2415_v12, %v1881_v61  ;;  %3532 = vrot.lane.b32.xlu1 %v2445_v58, %s4958_s22  ;;  %v6389_v58 = vld [vmem:[#allocation6_spill] sm:$0xff] }
 0x196   : > { %v4732_v56 = vpop.f32.mrf.mxu0  ;;  %v6126_v27 = vpop.f32.mrf.mxu1  ;;  %v1473_v12 = vadd.f32 %v5969_v7, %v6389_v58 }
 0x197   : > { %3534 = vrot.lane.b32.xlu0 %v2446_v38, %s4958_s22  ;;  %v2449_v61 = vadd.f32 %v4732_v56, %v5976_v13 }
 0x198   : > { %v2425_v44 = vpop.f32.mrf.mxu0  ;;  %v6132_v10 = vpop.f32.mrf.mxu1 }
 0x199   : > { %v2448_v26 = vadd.f32 %v2425_v44, %v1883_v0  ;;  %3536 = vrot.lane.b32.xlu1 %v2447_v59, %s4958_s22  ;;  %v2038_v59 = vadd.f32 %v6000_v37, %v1473_v12 }
 0x19a   : > { %v4767_v17 = vpop.f32.mrf.mxu0  ;;  %v4795_v8 = vpop.f32.mrf.mxu1 }
 0x19b   : > { %v2833_v53 = vadd.f32 %v4767_v17, %v5988_v31  ;;  %3538 = vrot.lane.b32.xlu0 %v2448_v26, %s4958_s22 }
 0x19c   : > { %v2753_v21 = vpop.f32.mrf.mxu0  ;;  %v2984_v39 = vpop.f32.mrf.mxu1 }
 0x19d   : > { %v2832_v38 = vadd.f32 %v2753_v21, %v2036_v62  ;;  %3540 = vrot.lane.b32.xlu1 %v2449_v61, %s4958_s22  ;;  %v3064_v44 = vadd.f32 %v4795_v8, %v2833_v53  ;;  %v2040_v61 = vadd.f32 %v6010_v33, %v1475_v35 }
 0x19e   : > { %v4770_v5 = vpop.f32.mrf.mxu0  ;;  %v4798_v0 = vpop.f32.mrf.mxu1 }
 0x19f   : > { %v3063_v47 = vadd.f32 %v2984_v39, %v2832_v38  ;;  %v2835_v13 = vadd.f32 %v4770_v5, %v5998_v57  ;;  %v6391_v39 = vld [vmem:[#allocation8_spill] sm:$0xff] }
 0x1a0   : > { %v2763_v56 = vpop.f32.mrf.mxu0  ;;  %v2994_v31 = vpop.f32.mrf.mxu1  ;;  %v1477_v58 = vadd.f32 %v5969_v7, %v6391_v39 }
 0x1a1   : > { %v2834_v26 = vadd.f32 %v2763_v56, %v2038_v59  ;;  %3593 = vrot.lane.b32.xlu1 %v3064_v44, %s4959_s23  ;;  %3591 = vrot.lane.b32.xlu0 %v3063_v47, %s4959_s23  ;;  %v3066_v37 = vadd.f32 %v4798_v0, %v2835_v13  ;;  %v6392_v13 = vld [vmem:[#allocation9_spill] sm:$0xff] }
 0x1a2   : > { %v4773_v17 = vpop.f32.mrf.mxu0  ;;  %v4801_v62 = vpop.f32.mrf.mxu1  ;;  %v2042_v59 = vadd.f32 %v6020_v16, %v1477_v58  ;;  %v1479_v56 = vadd.f32 %v5969_v7, %v6392_v13 }
 0x1a3   : > { %v3065_v8 = vadd.f32 %v2994_v31, %v2834_v26  ;;  %v2837_v53 = vadd.f32 %v4773_v17, %v6008_v48 }
 0x1a4   : > { %v2773_v57 = vpop.f32.mrf.mxu0  ;;  %v3004_v21 = vpop.f32.mrf.mxu1  ;;  %v2044_v26 = vadd.f32 %v6030_v29, %v1479_v56 }
 0x1a5   : > { %v2836_v12 = vadd.f32 %v2773_v57, %v2040_v61  ;;  %3597 = vrot.lane.b32.xlu1 %v3066_v37, %s4959_s23  ;;  %3595 = vrot.lane.b32.xlu0 %v3065_v8, %s4959_s23  ;;  %v3068_v44 = vadd.f32 %v4801_v62, %v2837_v53  ;;  %v6393_v37 = vld [vmem:[#allocation10_spill] sm:$0xff] }
 0x1a6   : > { %v4776_v38 = vpop.f32.mrf.mxu0  ;;  %v4804_v5 = vpop.f32.mrf.mxu1  ;;  %v1481_v8 = vadd.f32 %v5969_v7, %v6393_v37 }
 0x1a7   : > { %v3067_v33 = vadd.f32 %v3004_v21, %v2836_v12  ;;  %v2839_v0 = vadd.f32 %v4776_v38, %v6018_v25 }
 0x1a8   : > { %v2783_v47 = vpop.f32.mrf.mxu0  ;;  %v3014_v48 = vpop.f32.mrf.mxu1  ;;  %v2046_v39 = vadd.f32 %v6040_v14, %v1481_v8  ;;  %v6177_v14 = vld [vmem:[%s6368_s2 + $0x3] ss:$0 sm:$0xff] }
 0x1a9   : > { %v2838_v31 = vadd.f32 %v2783_v47, %v2042_v59  ;;  %3601 = vrot.lane.b32.xlu1 %v3068_v44, %s4959_s23  ;;  %3599 = vrot.lane.b32.xlu0 %v3067_v33, %s4959_s23  ;;  %v3070_v17 = vadd.f32 %v4804_v5, %v2839_v0  ;;  %v6394_v5 = vld [vmem:[#allocation11_spill] sm:$0xff] }
 0x1aa   : > { %v4779_v28 = vpop.f32.mrf.mxu0  ;;  %v4807_v35 = vpop.f32.mrf.mxu1  ;;  %v1483_v59 = vadd.f32 %v5969_v7, %v6394_v5 }
 0x1ab   : > { %v3069_v16 = vadd.f32 %v3014_v48, %v2838_v31  ;;  %v2841_v62 = vadd.f32 %v4779_v28, %v6028_v2  ;;  %v6395_v28 = vld [vmem:[#allocation12_spill] sm:$0xff] }
 0x1ac   : > { %v2793_v61 = vpop.f32.mrf.mxu0  ;;  %v3024_v25 = vpop.f32.mrf.mxu1  ;;  %v2048_v47 = vadd.f32 %v6050_v30, %v1483_v59 }
 0x1ad   : > { %v2840_v53 = vadd.f32 %v2793_v61, %v2044_v26  ;;  %3605 = vrot.lane.b32.xlu1 %v3070_v17, %s4959_s23  ;;  %3603 = vrot.lane.b32.xlu0 %v3069_v16, %s4959_s23  ;;  %v3072_v58 = vadd.f32 %v4807_v35, %v2841_v62  ;;  %v1485_v35 = vadd.f32 %v5969_v7, %v6395_v28 }
 0x1ae   : > { %v4782_v57 = vpop.f32.mrf.mxu0  ;;  %v4810_v21 = vpop.f32.mrf.mxu1  ;;  %v2204_v17 = vadd.f32 %v5984_v40, %v6177_v14  ;;  %v2203_v7 = vadd.f32 %v6177_v14, %v5992_v49  ;;  %v2206_v40 = vadd.f32 %v5996_v15, %v6177_v14  ;;  %v2205_v49 = vadd.f32 %v6177_v14, %v6002_v43 }
 0x1af   : > { %v3071_v29 = vadd.f32 %v3024_v25, %v2840_v53  ;;  %v2843_v12 = vadd.f32 %v4782_v57, %v6038_v20  ;;  %v2050_v30 = vadd.f32 %v6060_v60, %v1485_v35  ;;  %v2208_v15 = vadd.f32 %v6006_v3, %v6177_v14 }
 0x1b0   : > { %v2803_v38 = vpop.f32.mrf.mxu0  ;;  %v3034_v2 = vpop.f32.mrf.mxu1  ;;  %v2602_v53 = vadd.f32 %v6066_v55, %v2204_v17  ;;  %v2604_v55 = vadd.f32 %v6075_v50, %v2206_v40  ;;  %v2603_v59 = vadd.f32 %v6077_v11, %v2205_v49  ;;  %v2207_v43 = vadd.f32 %v6177_v14, %v6012_v1 }
 0x1b1   : > { %v2842_v44 = vadd.f32 %v2803_v38, %v2046_v39  ;;  %3609 = vrot.lane.b32.xlu1 %v3072_v58, %s4959_s23  ;;  %3607 = vrot.lane.b32.xlu0 %v3071_v29, %s4959_s23  ;;  %v3074_v20 = vadd.f32 %v4810_v21, %v2843_v12  ;;  %v2601_v39 = vadd.f32 %v6068_v42, %v2203_v7 }
 0x1b2   : > { %v4785_v33 = vpop.f32.mrf.mxu0  ;;  %v4813_v0 = vpop.f32.mrf.mxu1  ;;  %v2606_v50 = vadd.f32 %v6083_v34, %v2208_v15  ;;  %v2210_v3 = vadd.f32 %v6016_v24, %v6177_v14  ;;  %v2209_v34 = vadd.f32 %v6177_v14, %v6022_v6  ;;  %v2212_v24 = vadd.f32 %v6026_v36, %v6177_v14 }
 0x1b3   : > { %v3073_v48 = vadd.f32 %v3034_v2, %v2842_v44  ;;  %v2845_v13 = vadd.f32 %v4785_v33, %v6048_v4  ;;  %v2211_v6 = vadd.f32 %v6177_v14, %v6032_v22  ;;  %v2214_v36 = vadd.f32 %v6036_v32, %v6177_v14  ;;  %v6396_v32 = vld [vmem:[#allocation13_spill] sm:$0xff] }
 0x1b4   : > { %v2813_v56 = vpop.f32.mrf.mxu0  ;;  %v3044_v31 = vpop.f32.mrf.mxu1  ;;  %v2608_v17 = vadd.f32 %v6090_v18, %v2210_v3  ;;  %v2610_v18 = vadd.f32 %v6099_v9, %v2212_v24  ;;  %v2213_v22 = vadd.f32 %v6177_v14, %v6042_v19  ;;  %v6397_v19 = vld [vmem:[#allocation14_spill] sm:$0xff] }
 0x1b5   : > { %v2844_v26 = vadd.f32 %v2813_v56, %v2048_v47  ;;  %3613 = vrot.lane.b32.xlu1 %v3074_v20, %s4959_s23  ;;  %3611 = vrot.lane.b32.xlu0 %v3073_v48, %s4959_s23  ;;  %v3076_v61 = vadd.f32 %v4813_v0, %v2845_v13  ;;  %v2605_v56 = vadd.f32 %v6087_v52, %v2207_v43 }
 0x1b6   : > { %v4788_v16 = vpop.f32.mrf.mxu0  ;;  %v4816_v62 = vpop.f32.mrf.mxu1  ;;  %v2612_v9 = vadd.f32 %v6108_v41, %v2214_v36  ;;  %v2215_v41 = vadd.f32 %v6177_v14, %v6397_v19 }
 0x1b7   : > { %v3075_v25 = vadd.f32 %v3044_v31, %v2844_v26  ;;  %v2847_v4 = vadd.f32 %v4788_v16, %v6058_v54 }
 0x1b8   : > { %v2823_v37 = vpop.f32.mrf.mxu0  ;;  %v3054_v8 = vpop.f32.mrf.mxu1 }
 0x1b9   : > { %v2846_v57 = vadd.f32 %v2823_v37, %v2050_v30  ;;  %3617 = vrot.lane.b32.xlu1 %v3076_v61, %s4959_s23  ;;  %3615 = vrot.lane.b32.xlu0 %v3075_v25, %s4959_s23  ;;  %v3078_v54 = vadd.f32 %v4816_v62, %v2847_v4  ;;  %v2607_v30 = vadd.f32 %v6096_v23, %v2209_v34 }
 0x1ba   : > { %v4823_v60 = vpop.f32.mrf.mxu0  ;;  %v4851_v21 = vpop.f32.mrf.mxu1 }
 0x1bb   : > { %v3077_v58 = vadd.f32 %v3054_v8, %v2846_v57  ;;  %v3231_v29 = vadd.f32 %v4823_v60, %v2602_v53  ;;  %v2609_v57 = vadd.f32 %v6105_v46, %v2211_v6 }
 0x1bc   : > { %v3151_v12 = vpop.f32.mrf.mxu0  ;;  %v3382_v38 = vpop.f32.mrf.mxu1 }
 0x1bd   : > { %v3230_v2 = vadd.f32 %v3151_v12, %v2601_v39  ;;  %3621 = vrot.lane.b32.xlu1 %v3078_v54, %s4959_s23  ;;  %3619 = vrot.lane.b32.xlu0 %v3077_v58, %s4959_s23  ;;  %v3462_v44 = vadd.f32 %v4851_v21, %v3231_v29  ;;  %v2216_v29 = vadd.f32 %v6396_v32, %v6177_v14 }
 0x1be   : > { %v4826_v5 = vpop.f32.mrf.mxu0  ;;  %v4854_v42 = vpop.f32.mrf.mxu1 }
 0x1bf   : > { %v3461_v33 = vadd.f32 %v3382_v38, %v3230_v2  ;;  %v3233_v0 = vadd.f32 %v4826_v5, %v2604_v55  ;;  %v2611_v38 = vadd.f32 %v6114_v51, %v2213_v22 }
 0x1c0   : > { %v3161_v47 = vpop.f32.mrf.mxu0  ;;  %v3392_v20 = vpop.f32.mrf.mxu1 }
 0x1c1   : > { %v3232_v48 = vadd.f32 %v3161_v47, %v2603_v59  ;;  %3674 = vrot.lane.b32.xlu1 %v3462_v44, %s4960_s26  ;;  %3672 = vrot.lane.b32.xlu0 %v3461_v33, %s4960_s26  ;;  %v3464_v31 = vadd.f32 %v4854_v42, %v3233_v0  ;;  %v2614_v42 = vadd.f32 %v6117_v45, %v2216_v29  ;;  %v6398_v44 = vld [vmem:[#allocation15_spill] sm:$0xff] }
 0x1c2   : > { %v4829_v11 = vpop.f32.mrf.mxu0  ;;  %v4857_v13 = vpop.f32.mrf.mxu1  ;;  %v2218_v33 = vadd.f32 %v6398_v44, %v6177_v14  ;;  %v2613_v47 = vadd.f32 %v6123_v63, %v2215_v41 }
 0x1c3   : > { %v3463_v28 = vadd.f32 %v3392_v20, %v3232_v48  ;;  %v3235_v35 = vadd.f32 %v4829_v11, %v2606_v50  ;;  %v6399_v11 = vld [vmem:[#allocation16_spill] sm:$0xff] }
 0x1c4   : > { %v3171_v26 = vpop.f32.mrf.mxu0  ;;  %v3402_v1 = vpop.f32.mrf.mxu1  ;;  %v2217_v45 = vadd.f32 %v6177_v14, %v6399_v11 }
 0x1c5   : > { %v3234_v16 = vadd.f32 %v3171_v26, %v2605_v56  ;;  %3678 = vrot.lane.b32.xlu1 %v3464_v31, %s4960_s26  ;;  %3676 = vrot.lane.b32.xlu0 %v3463_v28, %s4960_s26  ;;  %v3466_v61 = vadd.f32 %v4857_v13, %v3235_v35  ;;  %v2616_v13 = vadd.f32 %v6126_v27, %v2218_v33 }
 0x1c6   : > { %v4832_v62 = vpop.f32.mrf.mxu0  ;;  %v4860_v52 = vpop.f32.mrf.mxu1  ;;  %v2615_v63 = vadd.f32 %v6132_v10, %v2217_v45 }
 0x1c7   : > { %v3465_v25 = vadd.f32 %v3402_v1, %v3234_v16  ;;  %v3237_v4 = vadd.f32 %v4832_v62, %v2608_v17 }
 0x1c8   : > { %v3181_v37 = vpop.f32.mrf.mxu0  ;;  %v3412_v8 = vpop.f32.mrf.mxu1 }
 0x1c9   : > { %v3236_v7 = vadd.f32 %v3181_v37, %v2607_v30  ;;  %3682 = vrot.lane.b32.xlu1 %v3466_v61, %s4960_s26  ;;  %3680 = vrot.lane.b32.xlu0 %v3465_v25, %s4960_s26  ;;  %v3468_v40 = vadd.f32 %v4860_v52, %v3237_v4 }
 0x1ca   : > { %v4835_v53 = vpop.f32.mrf.mxu0  ;;  %v4863_v23 = vpop.f32.mrf.mxu1 }
 0x1cb   : > { %v3467_v60 = vadd.f32 %v3412_v8, %v3236_v7  ;;  %v3239_v21 = vadd.f32 %v4835_v53, %v2610_v18 }
 0x1cc   : > { %v3191_v39 = vpop.f32.mrf.mxu0  ;;  %v3422_v54 = vpop.f32.mrf.mxu1 }
 0x1cd   : > { %v3238_v58 = vadd.f32 %v3191_v39, %v2609_v57  ;;  %3686 = vrot.lane.b32.xlu1 %v3468_v40, %s4960_s26  ;;  %3684 = vrot.lane.b32.xlu0 %v3467_v60, %s4960_s26  ;;  %v3470_v49 = vadd.f32 %v4863_v23, %v3239_v21 }
 0x1ce   : > { %v4838_v12 = vpop.f32.mrf.mxu0  ;;  %v4866_v46 = vpop.f32.mrf.mxu1 }
 0x1cf   : > { %v3469_v55 = vadd.f32 %v3422_v54, %v3238_v58  ;;  %v3241_v2 = vadd.f32 %v4838_v12, %v2612_v9 }
 0x1d0   : > { %v3201_v15 = vpop.f32.mrf.mxu0  ;;  %v3432_v5 = vpop.f32.mrf.mxu1 }
 0x1d1   : > { %v3240_v59 = vadd.f32 %v3201_v15, %v2611_v38  ;;  %3690 = vrot.lane.b32.xlu1 %v3470_v49, %s4960_s26  ;;  %3688 = vrot.lane.b32.xlu0 %v3469_v55, %s4960_s26  ;;  %v3472_v20 = vadd.f32 %v4866_v46, %v3241_v2 }
 0x1d2   : > { %v4841_v0 = vpop.f32.mrf.mxu0  ;;  %v4869_v51 = vpop.f32.mrf.mxu1 }
 0x1d3   : > { %v3471_v43 = vadd.f32 %v3432_v5, %v3240_v59  ;;  %v3243_v50 = vadd.f32 %v4841_v0, %v2614_v42 }
 0x1d4   : > { %v3211_v48 = vpop.f32.mrf.mxu0  ;;  %v3442_v3 = vpop.f32.mrf.mxu1 }
 0x1d5   : > { %v3242_v56 = vadd.f32 %v3211_v48, %v2613_v47  ;;  %3694 = vrot.lane.b32.xlu1 %v3472_v20, %s4960_s26  ;;  %3692 = vrot.lane.b32.xlu0 %v3471_v43, %s4960_s26  ;;  %v3474_v35 = vadd.f32 %v4869_v51, %v3243_v50 }
 0x1d6   : > { %v4844_v31 = vpop.f32.mrf.mxu0  ;;  %v4872_v28 = vpop.f32.mrf.mxu1 }
 0x1d7   : > { %v3473_v26 = vadd.f32 %v3442_v3, %v3242_v56  ;;  %v3245_v1 = vadd.f32 %v4844_v31, %v2616_v13 }
 0x1d8   : > { %v3221_v34 = vpop.f32.mrf.mxu0  ;;  %v3452_v27 = vpop.f32.mrf.mxu1 }
 0x1d9   : > { %v3244_v17 = vadd.f32 %v3221_v34, %v2615_v63  ;;  %3698 = vrot.lane.b32.xlu1 %v3474_v35, %s4960_s26  ;;  %3696 = vrot.lane.b32.xlu0 %v3473_v26, %s4960_s26  ;;  %v3476_v14 = vadd.f32 %v4872_v28, %v3245_v1 }
 0x1db   : > { %v3475_v16 = vadd.f32 %v3452_v27, %v3244_v17 }
 0x1dd   : > { %3702 = vrot.lane.b32.xlu1 %v3476_v14, %s4960_s26  ;;  %3700 = vrot.lane.b32.xlu0 %v3475_v16, %s4960_s26 }
 0x1ef   : > { %v3513_v10 = vpop.permute.xlu0 %3512 }
 0x1f0   : > { %3560 = vst.msk [vmem:[%s5884_s19 + $0x8] sm:$0xff] %vm3558_vm3, %v3513_v10 }
 0x1f3   : > { %v3511_v24 = vpop.permute.xlu0 %3510  ;;  %v3517_v62 = vpop.permute.xlu1 %3516 }
 0x1f4   : > { %3559 = vst.msk [vmem:[%s5884_s19] sm:$0xff] %vm3558_vm3, %v3511_v24  ;;  %3562 = vst.msk [vmem:[%s5884_s19 + $0x18] sm:$0xff] %vm3558_vm3, %v3517_v62 }
 0x1f7   : > { %v3515_v52 = vpop.permute.xlu1 %3514 }
 0x1f8   : > { %3561 = vst.msk [vmem:[%s5884_s19 + $0x10] sm:$0xff] %vm3558_vm3, %v3515_v52 }
 0x1f9   : > { %v3519_v30 = vpop.permute.xlu0 %3518 }
 0x1fa   : > { %3563 = vst.msk [vmem:[%s5884_s19 + $0x20] sm:$0xff] %vm3558_vm3, %v3519_v30 }
 0x1fb   : > { %v3521_v61 = vpop.permute.xlu1 %3520 }
 0x1fc   : > { %3564 = vst.msk [vmem:[%s5884_s19 + $0x28] sm:$0xff] %vm3558_vm3, %v3521_v61 }
 0x1fd   : > { %v3523_v25 = vpop.permute.xlu0 %3522 }
 0x1fe   : > { %3565 = vst.msk [vmem:[%s5884_s19 + $0x30] sm:$0xff] %vm3558_vm3, %v3523_v25 }
 0x1ff   : > { %v3525_v4 = vpop.permute.xlu1 %3524 }
 0x200   : > { %3566 = vst.msk [vmem:[%s5884_s19 + $0x38] sm:$0xff] %vm3558_vm3, %v3525_v4 }
 0x201   : > { %v3527_v37 = vpop.permute.xlu0 %3526 }
 0x202   : > { %3567 = vst.msk [vmem:[%s5884_s19 + $0x40] sm:$0xff] %vm3558_vm3, %v3527_v37 }
 0x203   : > { %v3529_v8 = vpop.permute.xlu1 %3528 }
 0x204   : > { %3568 = vst.msk [vmem:[%s5884_s19 + $0x48] sm:$0xff] %vm3558_vm3, %v3529_v8 }
 0x205   : > { %v3531_v6 = vpop.permute.xlu0 %3530 }
 0x206   : > { %3569 = vst.msk [vmem:[%s5884_s19 + $0x50] sm:$0xff] %vm3558_vm3, %v3531_v6 }
 0x207   : > { %v3533_v18 = vpop.permute.xlu1 %3532 }
 0x208   : > { %3570 = vst.msk [vmem:[%s5884_s19 + $0x58] sm:$0xff] %vm3558_vm3, %v3533_v18 }
 0x209   : > { %v3535_v7 = vpop.permute.xlu0 %3534 }
 0x20a   : > { %3571 = vst.msk [vmem:[%s5884_s19 + $0x60] sm:$0xff] %vm3558_vm3, %v3535_v7 }
 0x20b   : > { %v3537_v36 = vpop.permute.xlu1 %3536 }
 0x20c   : > { %3572 = vst.msk [vmem:[%s5884_s19 + $0x68] sm:$0xff] %vm3558_vm3, %v3537_v36 }
 0x20d   : > { %v3539_v53 = vpop.permute.xlu0 %3538 }
 0x20e   : > { %3573 = vst.msk [vmem:[%s5884_s19 + $0x70] sm:$0xff] %vm3558_vm3, %v3539_v53 }
 0x20f   : > { %v3541_v23 = vpop.permute.xlu1 %3540 }
 0x210   : > { %3574 = vst.msk [vmem:[%s5884_s19 + $0x78] sm:$0xff] %vm3558_vm3, %v3541_v23 }
 0x213   : > { %v3594_v57 = vpop.permute.xlu1 %3593  ;;  %v3592_v40 = vpop.permute.xlu0 %3591 }
 0x214   : > { %3641 = vst.msk [vmem:[%s5884_s19 + $0x8] sm:$0xff] %vm3639_vm4, %v3594_v57  ;;  %3640 = vst.msk [vmem:[%s5884_s19] sm:$0xff] %vm3639_vm4, %v3592_v40 }
 0x217   : > { %v3598_v60 = vpop.permute.xlu1 %3597  ;;  %v3596_v21 = vpop.permute.xlu0 %3595 }
 0x218   : > { %3643 = vst.msk [vmem:[%s5884_s19 + $0x18] sm:$0xff] %vm3639_vm4, %v3598_v60  ;;  %3642 = vst.msk [vmem:[%s5884_s19 + $0x10] sm:$0xff] %vm3639_vm4, %v3596_v21 }
 0x21b   : > { %v3602_v39 = vpop.permute.xlu1 %3601  ;;  %v3600_v54 = vpop.permute.xlu0 %3599 }
 0x21c   : > { %3645 = vst.msk [vmem:[%s5884_s19 + $0x28] sm:$0xff] %vm3639_vm4, %v3602_v39  ;;  %3644 = vst.msk [vmem:[%s5884_s19 + $0x20] sm:$0xff] %vm3639_vm4, %v3600_v54 }
 0x21f   : > { %v3606_v22 = vpop.permute.xlu1 %3605  ;;  %v3604_v9 = vpop.permute.xlu0 %3603 }
 0x220   : > { %3647 = vst.msk [vmem:[%s5884_s19 + $0x38] sm:$0xff] %vm3639_vm4, %v3606_v22  ;;  %3646 = vst.msk [vmem:[%s5884_s19 + $0x30] sm:$0xff] %vm3639_vm4, %v3604_v9 }
 0x223   : > { %v3610_v58 = vpop.permute.xlu1 %3609  ;;  %v3608_v32 = vpop.permute.xlu0 %3607 }
 0x224   : > { %3649 = vst.msk [vmem:[%s5884_s19 + $0x48] sm:$0xff] %vm3639_vm4, %v3610_v58  ;;  %3648 = vst.msk [vmem:[%s5884_s19 + $0x40] sm:$0xff] %vm3639_vm4, %v3608_v32 }
 0x227   : > { %v3614_v29 = vpop.permute.xlu1 %3613  ;;  %v3612_v12 = vpop.permute.xlu0 %3611 }
 0x228   : > { %3651 = vst.msk [vmem:[%s5884_s19 + $0x58] sm:$0xff] %vm3639_vm4, %v3614_v29  ;;  %3650 = vst.msk [vmem:[%s5884_s19 + $0x50] sm:$0xff] %vm3639_vm4, %v3612_v12 }
 0x22b   : > { %v3618_v46 = vpop.permute.xlu1 %3617  ;;  %v3616_v38 = vpop.permute.xlu0 %3615 }
 0x22c   : > { %3653 = vst.msk [vmem:[%s5884_s19 + $0x68] sm:$0xff] %vm3639_vm4, %v3618_v46  ;;  %3652 = vst.msk [vmem:[%s5884_s19 + $0x60] sm:$0xff] %vm3639_vm4, %v3616_v38 }
 0x22f   : > { %v3622_v49 = vpop.permute.xlu1 %3621  ;;  %v3620_v55 = vpop.permute.xlu0 %3619 }
 0x230   : > { %3655 = vst.msk [vmem:[%s5884_s19 + $0x78] sm:$0xff] %vm3639_vm4, %v3622_v49  ;;  %3654 = vst.msk [vmem:[%s5884_s19 + $0x70] sm:$0xff] %vm3639_vm4, %v3620_v55 }
 0x233   : > { %v3675_v2 = vpop.permute.xlu1 %3674  ;;  %v3673_v15 = vpop.permute.xlu0 %3672 }
 0x234   : > { %3722 = vst.msk [vmem:[%s5884_s19 + $0x8] sm:$0xff] %vm3720_vm5, %v3675_v2  ;;  %3721 = vst.msk [vmem:[%s5884_s19] sm:$0xff] %vm3720_vm5, %v3673_v15 }
 0x237   : > { %v3679_v5 = vpop.permute.xlu1 %3678  ;;  %v3677_v19 = vpop.permute.xlu0 %3676 }
 0x238   : > { %3724 = vst.msk [vmem:[%s5884_s19 + $0x18] sm:$0xff] %vm3720_vm5, %v3679_v5  ;;  %3723 = vst.msk [vmem:[%s5884_s19 + $0x10] sm:$0xff] %vm3720_vm5, %v3677_v19 }
 0x23b   : > { %v3683_v41 = vpop.permute.xlu1 %3682  ;;  %v3681_v42 = vpop.permute.xlu0 %3680 }
 0x23c   : > { %3726 = vst.msk [vmem:[%s5884_s19 + $0x28] sm:$0xff] %vm3720_vm5, %v3683_v41  ;;  %3725 = vst.msk [vmem:[%s5884_s19 + $0x20] sm:$0xff] %vm3720_vm5, %v3681_v42 }
 0x23f   : > { %v3687_v59 = vpop.permute.xlu1 %3686  ;;  %v3685_v44 = vpop.permute.xlu0 %3684 }
 0x240   : > { %3728 = vst.msk [vmem:[%s5884_s19 + $0x38] sm:$0xff] %vm3720_vm5, %v3687_v59  ;;  %3727 = vst.msk [vmem:[%s5884_s19 + $0x30] sm:$0xff] %vm3720_vm5, %v3685_v44 }
 0x243   : > { %v3691_v33 = vpop.permute.xlu1 %3690  ;;  %v3689_v0 = vpop.permute.xlu0 %3688 }
 0x244   : > { %3730 = vst.msk [vmem:[%s5884_s19 + $0x48] sm:$0xff] %vm3720_vm5, %v3691_v33  ;;  %3729 = vst.msk [vmem:[%s5884_s19 + $0x40] sm:$0xff] %vm3720_vm5, %v3689_v0 }
 0x247   : > { %v3695_v51 = vpop.permute.xlu1 %3694  ;;  %v3693_v47 = vpop.permute.xlu0 %3692 }
 0x248   : > { %3732 = vst.msk [vmem:[%s5884_s19 + $0x58] sm:$0xff] %vm3720_vm5, %v3695_v51  ;;  %3731 = vst.msk [vmem:[%s5884_s19 + $0x50] sm:$0xff] %vm3720_vm5, %v3693_v47 }
 0x24b   : > { %v3699_v20 = vpop.permute.xlu1 %3698  ;;  %v3697_v43 = vpop.permute.xlu0 %3696 }
 0x24c   : > { %3734 = vst.msk [vmem:[%s5884_s19 + $0x68] sm:$0xff] %vm3720_vm5, %v3699_v20  ;;  %3733 = vst.msk [vmem:[%s5884_s19 + $0x60] sm:$0xff] %vm3720_vm5, %v3697_v43 }
 0x24f   : > { %v3703_v50 = vpop.permute.xlu1 %3702  ;;  %v3701_v48 = vpop.permute.xlu0 %3700 }
 0x250   : > { %3736 = vst.msk [vmem:[%s5884_s19 + $0x78] sm:$0xff] %vm3720_vm5, %v3703_v50  ;;  %3735 = vst.msk [vmem:[%s5884_s19 + $0x70] sm:$0xff] %vm3720_vm5, %v3701_v48 }
 0x251 PF: > { %s13_s16 = sadd.s32 1, %s4956_s16   ;;  %s6400_s12 = smov %s4948_s14 }
 0x252   : > { %p10_p8 = scmp.ge.s32.totalorder %s13_s16, 8   ;;  %s6401_s13 = smov %s4952_s15 }
 0x253   : > { %s6402_s14 = smov %s6405_s17  ;;  %s6403_s15 = smov %s6409_s18 }
 0x254   :  { %12 = sbr.rel (!%p10_p8) target bundleno = 3 (0x3), region = 77 }

</bundles_post_ra>
